<compile_context>
chip_gen: v6e
topology: v6e:2x2x1
jax: 0.10.0
libtpu: 0.0.40
codegen_flags: <defaults>
</compile_context>

<pallas_src>
import jax
import jax.numpy as jnp
from jax.experimental import pallas as pl
from jax.experimental.pallas import tpu as pltpu

TILE_ROWS = 1024                      # row tile (sublane axis) for row-tiled kernels
OUT_PAD = 128                         # pad imnet out_dim to a lane-dense width for the MXU dot
VMEM_LIMIT_BYTES = 32 * 1024 * 1024   # explicit scoped-VMEM limit (v5e default is only 16 MiB)


def _round_up(n, m):
    return ((n + m - 1) // m) * m


def _pick_tile(n):
    """Row tile: as large as TILE_ROWS, but split small problems into >=2 grid steps
    (v7x has 2 TensorCores) and keep tiles multiples of 64 sublanes so the in-kernel
    leading-dim collapse reshape is layout-free for bf16/f32."""
    if n >= 2 * TILE_ROWS:
        return TILE_ROWS
    return max(64, _round_up((n + 1) // 2, 64))


# ----------------------------------------------------------------------------
# Pallas kernels
# ----------------------------------------------------------------------------
def _matmul_bias_kernel(x_ref, w_ref, b_ref, o_ref):
    # Encoder conv as im2col matmul:  (tile, K) @ (K, M) + (1, M)
    acc = jnp.dot(x_ref[...], w_ref[...], preferred_element_type=jnp.float32)
    o_ref[...] = (acc + b_ref[...]).astype(o_ref.dtype)


def matmul_bias(x, w, b):
    """y = x @ w + b, tiled over rows.  x:(N,K) w:(K,M) b:(M,) -> (N,M) f32."""
    N, K = x.shape
    M = w.shape[1]
    tile = _pick_tile(N)
    Np = _round_up(N, tile)
    xp = jnp.pad(x, ((0, Np - N), (0, 0)))
    out = pl.pallas_call(
        _matmul_bias_kernel,
        out_shape=jax.ShapeDtypeStruct((Np, M), jnp.float32),
        grid=(Np // tile,),
        in_specs=[
            pl.BlockSpec((tile, K), lambda i: (i, 0)),
            pl.BlockSpec((K, M), lambda i: (0, 0)),
            pl.BlockSpec((1, M), lambda i: (0, 0)),
        ],
        out_specs=pl.BlockSpec((tile, M), lambda i: (i, 0)),
        compiler_params=pltpu.CompilerParams(
            dimension_semantics=("parallel",),
            vmem_limit_bytes=VMEM_LIMIT_BYTES,
        ),
    )(xp, w, b.reshape(1, M))
    return out[:N]


def _liif_fused_kernel(inp_ref, area_ref, w1_ref, b1_ref, w2_ref, b2_ref,
                       w3_ref, b3_ref, o_ref):
    """All K local-ensemble branches of the imnet MLP + area-weighted combine, fused
    over one row tile of queries.  The K branches are folded into the matmul row dim.

    inp_ref : (K, T, D) bf16   per-branch MLP inputs [q_feat | rel_cell | rel_coord]
    area_ref: (T, K)    f32    per-branch areas (already swapped for local_ensemble)
    w*      : bf16 weights (hidden width padded to 128 lanes), b*: f32 (1, n) biases
    o_ref   : (T, Od)   f32    combined prediction, Od = true out_dim (contiguous rows)
    """
    K, T, D = inp_ref.shape
    Od = o_ref.shape[-1]

    # Ensemble weights: exact normalization (tiny (T, K) slab, K <= 4).
    area = area_ref[...]                                      # (T, K) f32
    wgt = area / jnp.sum(area, axis=1, keepdims=True)         # (T, K)

    # One fused MLP over all branches: (K, T, D) -> (K*T, D) is a leading-dim collapse
    # (layout-free since T is a multiple of the sublane tile).
    x = inp_ref[...].reshape(K * T, D)
    h = jnp.dot(x, w1_ref[...], preferred_element_type=jnp.float32) + b1_ref[...]
    h = jnp.maximum(h, 0.0).astype(w2_ref.dtype)              # f32 elementwise (v5e-safe), bf16 MXU
    h = jnp.dot(h, w2_ref[...], preferred_element_type=jnp.float32) + b2_ref[...]
    h = jnp.maximum(h, 0.0).astype(w3_ref.dtype)
    p = jnp.dot(h, w3_ref[...], preferred_element_type=jnp.float32) + b3_ref[...]  # (K*T, Op)

    # Area-weighted combine over the K branches (static row slices; drop padded lanes).
    out = p[0:T, :Od] * wgt[:, 0:1]
    for k in range(1, K):                                     # static unroll (K = 4 or 1)
        out = out + p[k * T:(k + 1) * T, :Od] * wgt[:, k:k + 1]
    o_ref[...] = out.astype(o_ref.dtype)


def fused_imnet_ensemble(inp_all, areas_sw, prepped, out_dim):
    """inp_all:(K,N,D) bf16, areas_sw:(N,K) f32 -> (N, out_dim) f32."""
    w1, b1, w2, b2, w3, b3 = prepped
    K, N, D = inp_all.shape
    Hp = w1.shape[1]
    Op = w3.shape[1]
    tile = _pick_tile(N)
    Np = _round_up(N, tile)
    inp_p = jnp.pad(inp_all, ((0, 0), (0, Np - N), (0, 0)))
    # padded rows get area 1.0 so the in-kernel normalization stays finite
    area_p = jnp.pad(areas_sw, ((0, Np - N), (0, 0)), constant_values=1.0)
    out = pl.pallas_call(
        _liif_fused_kernel,
        out_shape=jax.ShapeDtypeStruct((Np, out_dim), jnp.float32),
        grid=(Np // tile,),
        in_specs=[
            pl.BlockSpec((K, tile, D), lambda i: (0, i, 0)),
            pl.BlockSpec((tile, K), lambda i: (i, 0)),
            pl.BlockSpec((D, Hp), lambda i: (0, 0)),
            pl.BlockSpec((1, Hp), lambda i: (0, 0)),
            pl.BlockSpec((Hp, Hp), lambda i: (0, 0)),
            pl.BlockSpec((1, Hp), lambda i: (0, 0)),
            pl.BlockSpec((Hp, Op), lambda i: (0, 0)),
            pl.BlockSpec((1, Op), lambda i: (0, 0)),
        ],
        out_specs=pl.BlockSpec((tile, out_dim), lambda i: (i, 0)),
        compiler_params=pltpu.CompilerParams(
            dimension_semantics=("parallel",),
            vmem_limit_bytes=VMEM_LIMIT_BYTES,
        ),
    )(inp_p, area_p, w1, b1, w2, b2, w3, b3)
    return out[:N]


# ----------------------------------------------------------------------------
# JAX glue (coordinate generation, pixel-major conv / unfold, gather)
# ----------------------------------------------------------------------------
def make_coord(shape, flatten=True):
    """Same as LIIF's make_coord: cell-center coordinates in [-1, 1]."""
    seqs = []
    for n in shape:
        r = 1.0 / n
        seqs.append(-1.0 + r + (2.0 * r) * jnp.arange(n, dtype=jnp.float32))
    grids = jnp.meshgrid(*seqs, indexing="ij")
    ret = jnp.stack(grids, axis=-1)
    if flatten:
        ret = ret.reshape(-1, ret.shape[-1])
    return ret


def gen_feat(x, enc_params):
    """Per-image Conv2d(Cin, Cout, 3, padding=1) encoders, all fused into ONE Pallas
    matmul via a block-diagonal weight.  Returns pixel-major features (B, H*W, Ctot) —
    the layout the downstream gather wants (no per-branch transposes later)."""
    B, ims, Cin, H, W = x.shape
    Kin = Cin * 9
    cols_list = []
    for i in range(ims):
        xi = jnp.transpose(x[:, i], (0, 2, 3, 1))                  # (B, H, W, Cin)
        xp = jnp.pad(xi, ((0, 0), (1, 1), (1, 1), (0, 0)))
        # im2col in NHWC: per-pixel ordering (cin, ki*3+kj), matching
        # torch weight.reshape(Cout, Cin*9)
        cols = jnp.stack(
            [xp[:, ki:ki + H, kj:kj + W, :] for ki in range(3) for kj in range(3)],
            axis=-1,
        )                                                           # (B, H, W, Cin, 9)
        cols_list.append(cols.reshape(B * H * W, Kin))
    cols_all = jnp.concatenate(cols_list, axis=-1)                  # (BHW, ims*Kin)

    couts = [p[0].shape[0] for p in enc_params]
    Ctot = sum(couts)
    w_bd = jnp.zeros((ims * Kin, Ctot), jnp.float32)                # block-diagonal weight
    biases = []
    off = 0
    for i, (w, b) in enumerate(enc_params):
        cout = w.shape[0]
        wf = jnp.transpose(w.reshape(cout, Kin))                    # (Kin, Cout)
        w_bd = w_bd.at[i * Kin:(i + 1) * Kin, off:off + cout].set(wf)
        biases.append(b)
        off += cout
    b_all = jnp.concatenate(biases)
    feat = matmul_bias(cols_all, w_bd, b_all)                       # (BHW, Ctot)
    return feat.reshape(B, H * W, Ctot)


def unfold3x3_pix(feat_pix, H, W):
    """F.unfold(feat, 3, padding=1) in pixel-major layout.

    feat_pix:(B, H*W, C) -> (B, H*W, C*9), feature ordering (c, ki, kj)."""
    B, HW, C = feat_pix.shape
    f = feat_pix.reshape(B, H, W, C)
    fp = jnp.pad(f, ((0, 0), (1, 1), (1, 1), (0, 0)))
    u = jnp.stack(
        [fp[:, ki:ki + H, kj:kj + W, :] for ki in range(3) for kj in range(3)],
        axis=-1,
    )                                                               # (B, H, W, C, 9)
    return u.reshape(B, H * W, C * 9)


def prepare_imnet_params(imnet_params):
    """Cast MLP weights to bf16 for the MXU, pad the hidden width to a multiple of
    128 lanes and the final output to a lane-dense width (zero padding is
    mathematically identical: ReLU(0)=0 and padded w2/w3 rows are zero)."""
    w1, b1, w2, b2, w3, b3 = imnet_params
    Hd = w1.shape[1]
    out_dim = w3.shape[1]
    Hp = _round_up(Hd, 128)
    Op = _round_up(out_dim, OUT_PAD)
    w1p = jnp.pad(w1, ((0, 0), (0, Hp - Hd)))
    b1p = jnp.pad(b1, (0, Hp - Hd))
    w2p = jnp.pad(w2, ((0, Hp - Hd), (0, Hp - Hd)))
    b2p = jnp.pad(b2, (0, Hp - Hd))
    w3p = jnp.pad(w3, ((0, Hp - Hd), (0, Op - out_dim)))
    b3p = jnp.pad(b3, (0, Op - out_dim))
    prepped = (
        w1p.astype(jnp.bfloat16), b1p.reshape(1, Hp).astype(jnp.float32),
        w2p.astype(jnp.bfloat16), b2p.reshape(1, Hp).astype(jnp.float32),
        w3p.astype(jnp.bfloat16), b3p.reshape(1, Op).astype(jnp.float32),
    )
    return prepped, out_dim


def query_latent(feat_q, coord, cell, prepped, out_dim, H, W,
                 local_ensemble=True, cell_decode=True):
    """Replicates LIIF.query_latent (grid_sample mode='nearest', align_corners=False).
    All K ensemble branches + area-weighted combine run in one fused Pallas kernel.
    feat_q: (B, H*W, C9) bf16 pixel-major, already unfolded if feat_unfold."""
    B, Q = coord.shape[:2]

    if local_ensemble:
        vx_lst, vy_lst, eps_shift = [-1, 1], [-1, 1], 1e-6
    else:
        vx_lst, vy_lst, eps_shift = [0], [0], 0.0

    rx = 2.0 / H / 2.0
    ry = 2.0 / W / 2.0
    hw_scale = jnp.array([H, W], dtype=jnp.float32)

    inps, areas = [], []
    for vx in vx_lst:
        for vy in vy_lst:
            c0 = jnp.clip(coord[:, :, 0] + vx * rx + eps_shift, -1 + 1e-6, 1 - 1e-6)
            c1 = jnp.clip(coord[:, :, 1] + vy * ry + eps_shift, -1 + 1e-6, 1 - 1e-6)
            # nearest-neighbour grid_sample index (align_corners=False):
            # coord[...,0] indexes H, coord[...,1] indexes W (grid was flipped).
            iy = jnp.clip(jnp.round(((c0 + 1.0) * H - 1.0) / 2.0), 0, H - 1).astype(jnp.int32)
            ix = jnp.clip(jnp.round(((c1 + 1.0) * W - 1.0) / 2.0), 0, W - 1).astype(jnp.int32)
            lin = iy * W + ix                                              # (B, Q)
            # lane-contiguous gather: features already on the lane axis (bf16)
            q_feat = jnp.take_along_axis(feat_q, lin[:, :, None], axis=1)  # (B, Q, C9)
            q_coord = jnp.stack(
                [-1.0 + (2.0 * iy.astype(jnp.float32) + 1.0) / H,
                 -1.0 + (2.0 * ix.astype(jnp.float32) + 1.0) / W],
                axis=-1,
            )                                                              # (B, Q, 2)
            rel_coord = (coord - q_coord) * hw_scale                       # f32

            parts = [q_feat]
            if cell_decode:
                parts.append((cell * hw_scale).astype(jnp.bfloat16))
            # TODO(synk): rel_coord / rel_cell ride in bf16 with the features; split them
            #             into a small separate f32 side-dot if interpolation fidelity matters.
            parts.append(rel_coord.astype(jnp.bfloat16))
            inp = jnp.concatenate(parts, axis=-1)                          # (B, Q, D) bf16
            inps.append(inp.reshape(B * Q, -1))
            area = jnp.abs(rel_coord[..., 0] * rel_coord[..., 1]) + 1e-9   # f32 precision
            areas.append(area.reshape(B * Q))

    if local_ensemble:
        areas[0], areas[3] = areas[3], areas[0]
        areas[1], areas[2] = areas[2], areas[1]

    inp_all = jnp.stack(inps, axis=0)            # (K, B*Q, D) bf16
    areas_sw = jnp.stack(areas, axis=-1)         # (B*Q, K)    f32
    out = fused_imnet_ensemble(inp_all, areas_sw, prepped, out_dim)  # (B*Q, out_dim) f32
    return out.reshape(B, Q, out_dim)


def liif_forward(x, enc_params, imnet_params, res_scaling=1, coord_batch_size=131072,
                 local_ensemble=True, feat_unfold=True, cell_decode=True):
    """Replicates LIIF.forward (the PyTorch forward assumes batch=1: coord.unsqueeze(0))."""
    B, ims, _, H, W = x.shape
    Hh = H * res_scaling
    Ww = W * res_scaling

    coord = make_coord((Hh, Ww))                           # (n, 2)
    cell = jnp.ones_like(coord)
    cell = cell.at[:, 0].multiply(2.0 / Hh)
    cell = cell.at[:, 1].multiply(2.0 / Ww)
    coord = jnp.broadcast_to(coord[None], (B,) + coord.shape)
    cell = jnp.broadcast_to(cell[None], (B,) + cell.shape)

    feat_pix = gen_feat(x, enc_params)                     # (B, H*W, Ctot) pixel-major, f32
    feat_b = feat_pix.astype(jnp.bfloat16)                 # MXU dtype; halves unfold/gather HBM
    feat_q = unfold3x3_pix(feat_b, H, W) if feat_unfold else feat_b   # hoisted out of chunk loop
    prepped, out_dim = prepare_imnet_params(imnet_params)

    n = coord.shape[1]
    cbs = max(TILE_ROWS, (coord_batch_size // TILE_ROWS) * TILE_ROWS)   # tile-aligned chunks
    preds = []
    ql = 0
    while ql < n:
        qr = min(ql + cbs, n)
        preds.append(query_latent(feat_q, coord[:, ql:qr], cell[:, ql:qr],
                                  prepped, out_dim, H, W, local_ensemble, cell_decode))
        ql = qr
    preds = jnp.concatenate(preds, axis=1)                 # (B, n, out_dim)
    # Reproduces PyTorch `preds.view(b, out_dim, h, w)` (raw row-major view, NOT a permute).
    return preds.reshape(B, out_dim, Hh, Ww)


# ----------------------------------------------------------------------------
# Deterministic synthetic parameters
# ----------------------------------------------------------------------------
def init_params(key, ims, c_in, enc_out_dim, hidden, out_dim):
    keys = jax.random.split(key, 2 * ims + 3)
    enc_params = []
    for i in range(ims):
        fan_in = c_in * 9
        w = jax.random.normal(keys[2 * i], (enc_out_dim, c_in, 3, 3), jnp.float32) / jnp.sqrt(fan_in)
        b = 0.01 * jax.random.normal(keys[2 * i + 1], (enc_out_dim,), jnp.float32)
        enc_params.append((w, b))
    c_tot = ims * enc_out_dim
    in_dim = c_tot * 9 + 2 + 2                             # feat_unfold*9 + cell(2) + coord(2)
    k1, k2, k3 = keys[2 * ims:]
    w1 = jax.random.normal(k1, (in_dim, hidden), jnp.float32) / jnp.sqrt(in_dim)
    b1 = jnp.zeros((hidden,), jnp.float32)
    w2 = jax.random.normal(k2, (hidden, hidden), jnp.float32) / jnp.sqrt(hidden)
    b2 = jnp.zeros((hidden,), jnp.float32)
    w3 = jax.random.normal(k3, (hidden, out_dim), jnp.float32) / jnp.sqrt(hidden)
    b3 = jnp.zeros((out_dim,), jnp.float32)
    return enc_params, (w1, b1, w2, b2, w3, b3)


if __name__ == "__main__":
    # Small shapes implied by the forward (batch must be 1: coord.unsqueeze(0)).
    B, IMS, C_IN, H, W = 1, 2, 1, 16, 16
    ENC_OUT, HIDDEN, OUT_DIM = 8, 32, 3

    key = jax.random.PRNGKey(0)
    kx, kp = jax.random.split(key)
    x = jax.random.normal(kx, (B, IMS, C_IN, H, W), jnp.float32)
    enc_params, imnet_params = init_params(kp, IMS, C_IN, ENC_OUT, HIDDEN, OUT_DIM)

    fwd = jax.jit(liif_forward,
                  static_argnames=("res_scaling", "coord_batch_size",
                                   "local_ensemble", "feat_unfold", "cell_decode"))

    out1 = jax.block_until_ready(fwd(x, enc_params, imnet_params, res_scaling=1))
    assert out1.shape == (B, OUT_DIM, H, W), out1.shape
    assert bool(jnp.all(jnp.isfinite(out1)))

    # super-resolution path (exercises a multi-step row grid in the fused kernel)
    out2 = jax.block_until_ready(fwd(x, enc_params, imnet_params, res_scaling=2))
    assert out2.shape == (B, OUT_DIM, 2 * H, 2 * W), out2.shape
    assert bool(jnp.all(jnp.isfinite(out2)))

    print("KERNEL_OK")
</pallas_src>

<mosaic_0001>
module attributes {stable_mosaic.version = 11 : i64} {
  func.func @_matmul_bias_kernel(%arg0: i32, %arg1: memref<128x18xf32, #tpu.memory_space<vmem>>, %arg2: memref<18x16xf32, #tpu.memory_space<vmem>>, %arg3: memref<1x16xf32, #tpu.memory_space<vmem>>, %arg4: memref<128x16xf32, #tpu.memory_space<vmem>>) attributes {dimension_semantics = [#tpu.dimension_semantics<parallel>], iteration_bounds = array<i64: 2>, scalar_prefetch = 0 : i64, scratch_operands = 0 : i64, tpu.core_type = #tpu.core_type<tc>, window_params = [{transform_indices = @transform_0, window_bounds = array<i64: 128, 18>}, {pipeline_mode = #tpu.pipeline_mode<synchronous>, transform_indices = @transform_1, window_bounds = array<i64: 18, 16>}, {pipeline_mode = #tpu.pipeline_mode<synchronous>, transform_indices = @transform_2, window_bounds = array<i64: 1, 16>}, {transform_indices = @transform_3, window_bounds = array<i64: 128, 16>}]} {
    %c0 = arith.constant 0 : index
    %c0_0 = arith.constant 0 : index
    %0 = vector.load %arg1[%c0, %c0_0] : memref<128x18xf32, #tpu.memory_space<vmem>>, vector<128x18xf32>
    %c0_1 = arith.constant 0 : index
    %c0_2 = arith.constant 0 : index
    %1 = vector.load %arg2[%c0_1, %c0_2] : memref<18x16xf32, #tpu.memory_space<vmem>>, vector<18x16xf32>
    %cst = arith.constant dense<0.000000e+00> : vector<128x16xf32>
    %2 = tpu.matmul %0, %1, %cst {dimension_numbers = #tpu.dot_dimension_numbers<[1], [0], [0], [1], [0, 0, 1, 1], [], []>} : vector<128x18xf32>, vector<18x16xf32>, vector<128x16xf32> -> vector<128x16xf32>
    %c0_3 = arith.constant 0 : index
    %c0_4 = arith.constant 0 : index
    %3 = vector.load %arg3[%c0_3, %c0_4] : memref<1x16xf32, #tpu.memory_space<vmem>>, vector<1x16xf32>
    %4 = vector.broadcast %3 : vector<1x16xf32> to vector<128x16xf32>
    %5 = arith.addf %2, %4 : vector<128x16xf32>
    %c0_5 = arith.constant 0 : index
    %c0_6 = arith.constant 0 : index
    %6 = vector.load %arg4[%c0_5, %c0_6] : memref<128x16xf32, #tpu.memory_space<vmem>>, vector<128x16xf32>
    tpu.vector_store %arg4[%c0_5, %c0_6], %5 {strides = array<i32>} : memref<128x16xf32, #tpu.memory_space<vmem>>, vector<128x16xf32>,
    return
  }
  func.func @transform_0(%arg0: i32) -> (i32, i32) {
    %c0_i32 = arith.constant 0 : i32
    %c0_i32_0 = arith.constant 0 : i32
    return %arg0, %c0_i32 : i32, i32
  }
  func.func @transform_1(%arg0: i32) -> (i32, i32) {
    %c0_i32 = arith.constant 0 : i32
    %c0_i32_0 = arith.constant 0 : i32
    %c0_i32_1 = arith.constant 0 : i32
    return %c0_i32, %c0_i32_0 : i32, i32
  }
  func.func @transform_2(%arg0: i32) -> (i32, i32) {
    %c0_i32 = arith.constant 0 : i32
    %c0_i32_0 = arith.constant 0 : i32
    %c0_i32_1 = arith.constant 0 : i32
    return %c0_i32, %c0_i32_0 : i32, i32
  }
  func.func @transform_3(%arg0: i32) -> (i32, i32) {
    %c0_i32 = arith.constant 0 : i32
    %c0_i32_0 = arith.constant 0 : i32
    return %arg0, %c0_i32 : i32, i32
  }
}

module attributes {stable_mosaic.version = 11 : i64} {
  func.func @_liif_fused_kernel(%arg0: i32, %arg1: memref<4x128x148xbf16, #tpu.memory_space<vmem>>, %arg2: memref<128x4xf32, #tpu.memory_space<vmem>>, %arg3: memref<148x128xbf16, #tpu.memory_space<vmem>>, %arg4: memref<1x128xf32, #tpu.memory_space<vmem>>, %arg5: memref<128x128xbf16, #tpu.memory_space<vmem>>, %arg6: memref<1x128xf32, #tpu.memory_space<vmem>>, %arg7: memref<128x128xbf16, #tpu.memory_space<vmem>>, %arg8: memref<1x128xf32, #tpu.memory_space<vmem>>, %arg9: memref<128x3xf32, #tpu.memory_space<vmem>>) attributes {dimension_semantics = [#tpu.dimension_semantics<parallel>], iteration_bounds = array<i64: 2>, scalar_prefetch = 0 : i64, scratch_operands = 0 : i64, tpu.core_type = #tpu.core_type<tc>, window_params = [{transform_indices = @transform_0, window_bounds = array<i64: 4, 128, 148>}, {transform_indices = @transform_1, window_bounds = array<i64: 128, 4>}, {pipeline_mode = #tpu.pipeline_mode<synchronous>, transform_indices = @transform_2, window_bounds = array<i64: 148, 128>}, {pipeline_mode = #tpu.pipeline_mode<synchronous>, transform_indices = @transform_3, window_bounds = array<i64: 1, 128>}, {pipeline_mode = #tpu.pipeline_mode<synchronous>, transform_indices = @transform_4, window_bounds = array<i64: 128, 128>}, {pipeline_mode = #tpu.pipeline_mode<synchronous>, transform_indices = @transform_5, window_bounds = array<i64: 1, 128>}, {pipeline_mode = #tpu.pipeline_mode<synchronous>, transform_indices = @transform_6, window_bounds = array<i64: 128, 128>}, {pipeline_mode = #tpu.pipeline_mode<synchronous>, transform_indices = @transform_7, window_bounds = array<i64: 1, 128>}, {transform_indices = @transform_8, window_bounds = array<i64: 128, 3>}]} {
    %c0 = arith.constant 0 : index
    %c0_0 = arith.constant 0 : index
    %0 = vector.load %arg2[%c0, %c0_0] : memref<128x4xf32, #tpu.memory_space<vmem>>, vector<128x4xf32>
    %cst = arith.constant dense<0.000000e+00> : vector<128xf32>
    %1 = vector.multi_reduction <add>, %0, %cst [1] : vector<128x4xf32> to vector<128xf32>
    %2 = vector.shape_cast %1 : vector<128xf32> to vector<128x1xf32>
    %3 = vector.broadcast %2 : vector<128x1xf32> to vector<128x4xf32>
    %4 = arith.divf %0, %3 : vector<128x4xf32>
    %c0_1 = arith.constant 0 : index
    %c0_2 = arith.constant 0 : index
    %c0_3 = arith.constant 0 : index
    %5 = vector.load %arg1[%c0_1, %c0_2, %c0_3] : memref<4x128x148xbf16, #tpu.memory_space<vmem>>, vector<4x128x148xbf16>
    %6 = vector.shape_cast %5 : vector<4x128x148xbf16> to vector<512x148xbf16>
    %c0_4 = arith.constant 0 : index
    %c0_5 = arith.constant 0 : index
    %7 = vector.load %arg3[%c0_4, %c0_5] : memref<148x128xbf16, #tpu.memory_space<vmem>>, vector<148x128xbf16>
    %cst_6 = arith.constant dense<0.000000e+00> : vector<512x128xf32>
    %8 = tpu.matmul %6, %7, %cst_6 {dimension_numbers = #tpu.dot_dimension_numbers<[1], [0], [0], [1], [0, 0, 1, 1], [], []>} : vector<512x148xbf16>, vector<148x128xbf16>, vector<512x128xf32> -> vector<512x128xf32>
    %c0_7 = arith.constant 0 : index
    %c0_8 = arith.constant 0 : index
    %9 = vector.load %arg4[%c0_7, %c0_8] : memref<1x128xf32, #tpu.memory_space<vmem>>, vector<1x128xf32>
    %10 = vector.broadcast %9 : vector<1x128xf32> to vector<512x128xf32>
    %11 = arith.addf %8, %10 : vector<512x128xf32>
    %cst_9 = arith.constant 0.000000e+00 : f32
    %12 = vector.broadcast %cst_9 : f32 to vector<512x128xf32>
    %13 = arith.maximumf %11, %12 : vector<512x128xf32>
    %14 = arith.truncf %13 : vector<512x128xf32> to vector<512x128xbf16>
    %c0_10 = arith.constant 0 : index
    %c0_11 = arith.constant 0 : index
    %15 = vector.load %arg5[%c0_10, %c0_11] : memref<128x128xbf16, #tpu.memory_space<vmem>>, vector<128x128xbf16>
    %cst_12 = arith.constant dense<0.000000e+00> : vector<512x128xf32>
    %16 = tpu.matmul %14, %15, %cst_12 {dimension_numbers = #tpu.dot_dimension_numbers<[1], [0], [0], [1], [0, 0, 1, 1], [], []>} : vector<512x128xbf16>, vector<128x128xbf16>, vector<512x128xf32> -> vector<512x128xf32>
    %c0_13 = arith.constant 0 : index
    %c0_14 = arith.constant 0 : index
    %17 = vector.load %arg6[%c0_13, %c0_14] : memref<1x128xf32, #tpu.memory_space<vmem>>, vector<1x128xf32>
    %18 = vector.broadcast %17 : vector<1x128xf32> to vector<512x128xf32>
    %19 = arith.addf %16, %18 : vector<512x128xf32>
    %cst_15 = arith.constant 0.000000e+00 : f32
    %20 = vector.broadcast %cst_15 : f32 to vector<512x128xf32>
    %21 = arith.maximumf %19, %20 : vector<512x128xf32>
    %22 = arith.truncf %21 : vector<512x128xf32> to vector<512x128xbf16>
    %c0_16 = arith.constant 0 : index
    %c0_17 = arith.constant 0 : index
    %23 = vector.load %arg7[%c0_16, %c0_17] : memref<128x128xbf16, #tpu.memory_space<vmem>>, vector<128x128xbf16>
    %cst_18 = arith.constant dense<0.000000e+00> : vector<512x128xf32>
    %24 = tpu.matmul %22, %23, %cst_18 {dimension_numbers = #tpu.dot_dimension_numbers<[1], [0], [0], [1], [0, 0, 1, 1], [], []>} : vector<512x128xbf16>, vector<128x128xbf16>, vector<512x128xf32> -> vector<512x128xf32>
    %c0_19 = arith.constant 0 : index
    %c0_20 = arith.constant 0 : index
    %25 = vector.load %arg8[%c0_19, %c0_20] : memref<1x128xf32, #tpu.memory_space<vmem>>, vector<1x128xf32>
    %26 = vector.broadcast %25 : vector<1x128xf32> to vector<512x128xf32>
    %27 = arith.addf %24, %26 : vector<512x128xf32>
    %28 = vector.extract_strided_slice %27 {offsets = [0, 0], sizes = [128, 3], strides = [1, 1]} : vector<512x128xf32> to vector<128x3xf32>
    %29 = vector.extract_strided_slice %4 {offsets = [0, 0], sizes = [128, 1], strides = [1, 1]} : vector<128x4xf32> to vector<128x1xf32>
    %30 = vector.broadcast %29 : vector<128x1xf32> to vector<128x3xf32>
    %31 = arith.mulf %28, %30 : vector<128x3xf32>
    %32 = vector.extract_strided_slice %27 {offsets = [128, 0], sizes = [128, 3], strides = [1, 1]} : vector<512x128xf32> to vector<128x3xf32>
    %33 = vector.extract_strided_slice %4 {offsets = [0, 1], sizes = [128, 1], strides = [1, 1]} : vector<128x4xf32> to vector<128x1xf32>
    %34 = vector.broadcast %33 : vector<128x1xf32> to vector<128x3xf32>
    %35 = arith.mulf %32, %34 : vector<128x3xf32>
    %36 = arith.addf %31, %35 : vector<128x3xf32>
    %37 = vector.extract_strided_slice %27 {offsets = [256, 0], sizes = [128, 3], strides = [1, 1]} : vector<512x128xf32> to vector<128x3xf32>
    %38 = vector.extract_strided_slice %4 {offsets = [0, 2], sizes = [128, 1], strides = [1, 1]} : vector<128x4xf32> to vector<128x1xf32>
    %39 = vector.broadcast %38 : vector<128x1xf32> to vector<128x3xf32>
    %40 = arith.mulf %37, %39 : vector<128x3xf32>
    %41 = arith.addf %36, %40 : vector<128x3xf32>
    %42 = vector.extract_strided_slice %27 {offsets = [384, 0], sizes = [128, 3], strides = [1, 1]} : vector<512x128xf32> to vector<128x3xf32>
    %43 = vector.extract_strided_slice %4 {offsets = [0, 3], sizes = [128, 1], strides = [1, 1]} : vector<128x4xf32> to vector<128x1xf32>
    %44 = vector.broadcast %43 : vector<128x1xf32> to vector<128x3xf32>
    %45 = arith.mulf %42, %44 : vector<128x3xf32>
    %46 = arith.addf %41, %45 : vector<128x3xf32>
    %c0_21 = arith.constant 0 : index
    %c0_22 = arith.constant 0 : index
    %47 = vector.load %arg9[%c0_21, %c0_22] : memref<128x3xf32, #tpu.memory_space<vmem>>, vector<128x3xf32>
    tpu.vector_store %arg9[%c0_21, %c0_22], %46 {strides = array<i32>} : memref<128x3xf32, #tpu.memory_space<vmem>>, vector<128x3xf32>,
    return
  }
  func.func @transform_0(%arg0: i32) -> (i32, i32, i32) {
    %c0_i32 = arith.constant 0 : i32
    %c0_i32_0 = arith.constant 0 : i32
    %c0_i32_1 = arith.constant 0 : i32
    return %c0_i32, %arg0, %c0_i32_0 : i32, i32, i32
  }
  func.func @transform_1(%arg0: i32) -> (i32, i32) {
    %c0_i32 = arith.constant 0 : i32
    %c0_i32_0 = arith.constant 0 : i32
    return %arg0, %c0_i32 : i32, i32
  }
  func.func @transform_2(%arg0: i32) -> (i32, i32) {
    %c0_i32 = arith.constant 0 : i32
    %c0_i32_0 = arith.constant 0 : i32
    %c0_i32_1 = arith.constant 0 : i32
    return %c0_i32, %c0_i32_0 : i32, i32
  }
  func.func @transform_3(%arg0: i32) -> (i32, i32) {
    %c0_i32 = arith.constant 0 : i32
    %c0_i32_0 = arith.constant 0 : i32
    %c0_i32_1 = arith.constant 0 : i32
    return %c0_i32, %c0_i32_0 : i32, i32
  }
  func.func @transform_4(%arg0: i32) -> (i32, i32) {
    %c0_i32 = arith.constant 0 : i32
    %c0_i32_0 = arith.constant 0 : i32
    %c0_i32_1 = arith.constant 0 : i32
    return %c0_i32, %c0_i32_0 : i32, i32
  }
  func.func @transform_5(%arg0: i32) -> (i32, i32) {
    %c0_i32 = arith.constant 0 : i32
    %c0_i32_0 = arith.constant 0 : i32
    %c0_i32_1 = arith.constant 0 : i32
    return %c0_i32, %c0_i32_0 : i32, i32
  }
  func.func @transform_6(%arg0: i32) -> (i32, i32) {
    %c0_i32 = arith.constant 0 : i32
    %c0_i32_0 = arith.constant 0 : i32
    %c0_i32_1 = arith.constant 0 : i32
    return %c0_i32, %c0_i32_0 : i32, i32
  }
  func.func @transform_7(%arg0: i32) -> (i32, i32) {
    %c0_i32 = arith.constant 0 : i32
    %c0_i32_0 = arith.constant 0 : i32
    %c0_i32_1 = arith.constant 0 : i32
    return %c0_i32, %c0_i32_0 : i32, i32
  }
  func.func @transform_8(%arg0: i32) -> (i32, i32) {
    %c0_i32 = arith.constant 0 : i32
    %c0_i32_0 = arith.constant 0 : i32
    return %arg0, %c0_i32 : i32, i32
  }
}

</mosaic_0001>

<bundles_post_ra>
// kernel: liif_forward.2
= control target key start
LH: loop header
LB: loop body
LE: loop exit
PB: predicated region body
PF: predicated region fallthrough
CT: control target
= control target key end

     0   :  { %s591_s12 = smov 0   ;;  %s677_s0 = inlined_call_operand.vmem [shape: f32[256,18], index: 0, kind: input, shape index: {}]   ;;  %s678_s1 = inlined_call_operand.vmem [shape: f32[18,16], index: 1, kind: input, shape index: {}]   ;;  %s679_s2 = inlined_call_operand.vmem [shape: f32[1,16], index: 2, kind: input, shape index: {}]   ;;  %s680_s3 = inlined_call_operand.vmem [shape: f32[256,16], index: 3, kind: output, shape index: {}]  }
   0x1 LB: > { %s471_s13 = sadd.s32 4294967295, %s569_s12   ;;  %p475_p0 = scmp.ge.s32.totalorder %s569_s12, 1  ;;  %s569_s12 = sphi %s591_s12, %s13_s12  }
   0x2   : > { %p138_p1 = scmp.lt.s32.totalorder %s569_s12, 3 }
   0x4   : > { %p139_p2 = pnand %p475_p0, %p138_p1 }
   0x5   : > { %s476_s18 = sshll.u32 (!%p139_p2), %s471_s13, 4 }
   0x6   : > { %142 = sbr.rel (%p139_p2) target bundleno = 229 (0xe5), region = 32  ;;  %p163_p3 = scmp.lt.s32.totalorder (!%p139_p2), %s476_s18, 31 }
   0xb   : > { %v192_v0 = vld [vmem:[%s678_s1 + $0x10] sm:$0x3]  ;;  %vm249_vm0 = vcmask 1041408   ;;  %v191_v1 = vld [vmem:[%s678_s1 + $0x8] sm:$0xff]  ;;  %v190_v2 = vld [vmem:[%s678_s1] sm:$0xff]  ;;  %s682_s18 = smov (!%p163_p3, %s476_s18), 31 }
   0xc   : > { %519 = vmatprep.subr.msk.mxu0 %vm249_vm0, %v192_v0  ;;  %549 = vmatprep.subr.msk.mxu1 %vm249_vm0, %v192_v0  ;;  %s477_s21 = sshll.u32 %s682_s18, 3  ;;  %vm200_vm1 = vcmask 146432   ;;  %v480_v19 = vld [vmem:[%s679_s2] ss:$0 sm:$0xff]  ;;  %vm398_vm2 = vcmask 130048  }
   0xd   : > { %520 = vmatpush3.msk.msra.mxu0 %vm249_vm0, %v192_v0  ;;  %552 = vmatpush3.msk.msra.mxu1 %vm249_vm0, %v192_v0  ;;  %s166_s24 = scalar_lea.vmem %s677_s0, %s477_s21  ;;  %s640_s29 = scalar_lea.vmem %s680_s3, %s477_s21 }
   0xe   : > { %521 = vmatprep.subr.mxu0 %v191_v1  ;;  %550 = vmatprep.subr.mxu1 %v191_v1  ;;  %v174_v3 = vld [vmem:[%s166_s24] sm:$0xff]  ;;  %v175_v5 = vld [vmem:[%s166_s24 + $0x8] sm:$0xff]  ;;  %v176_v7 = vld [vmem:[%s166_s24 + $0x10] sm:$0xff] }
   0xf   : > { %522 = vmatpush3.msra.mxu0 %v191_v1  ;;  %553 = vmatpush3.msra.mxu1 %v191_v1  ;;  %v182_v4 = vld [vmem:[%s166_s24 + $0x40] sm:$0xff]  ;;  %v183_v6 = vld [vmem:[%s166_s24 + $0x48] sm:$0xff]  ;;  %v184_v8 = vld [vmem:[%s166_s24 + $0x50] sm:$0xff] }
  0x10   : > { %523 = vmatprep.subr.mxu0 %v190_v2  ;;  %551 = vmatprep.subr.mxu1 %v190_v2  ;;  %v177_v9 = vld [vmem:[%s166_s24 + $0x18] sm:$0xff]  ;;  %v178_v11 = vld [vmem:[%s166_s24 + $0x20] sm:$0xff]  ;;  %v179_v13 = vld [vmem:[%s166_s24 + $0x28] sm:$0xff] }
  0x11   : > { %524 = vmatpush3.msra.mxu0 %v190_v2  ;;  %554 = vmatpush3.msra.mxu1 %v190_v2  ;;  %v185_v10 = vld [vmem:[%s166_s24 + $0x58] sm:$0xff]  ;;  %v186_v12 = vld [vmem:[%s166_s24 + $0x60] sm:$0xff]  ;;  %v187_v14 = vld [vmem:[%s166_s24 + $0x68] sm:$0xff] }
  0x12   : > { %525 = vmatprep.mubr.msk.f32.mxu0 %vm200_vm1, %v174_v3  ;;  %537 = vmatprep.mubr.msk.f32.mxu1 %vm200_vm1, %v182_v4  ;;  %v180_v15 = vld [vmem:[%s166_s24 + $0x30] sm:$0xff]  ;;  %v181_v17 = vld [vmem:[%s166_s24 + $0x38] sm:$0xff] }
  0x13   : > { %526 = vmatmul.mubr.msk.f32.vlgmr.msra.gmra.mxu0 %vm200_vm1, %v175_v5  ;;  %538 = vmatmul.mubr.msk.f32.vlgmr.msra.gmra.mxu1 %vm200_vm1, %v183_v6  ;;  %v188_v16 = vld [vmem:[%s166_s24 + $0x70] sm:$0xff]  ;;  %v189_v18 = vld [vmem:[%s166_s24 + $0x78] sm:$0xff] }
  0x14   : > { %528 = vmatprep.mubr.msk.f32.mxu0 %vm200_vm1, %v176_v7  ;;  %540 = vmatprep.mubr.msk.f32.mxu1 %vm200_vm1, %v184_v8 }
  0x17   : > { %529 = vmatmul.mubr.msk.f32.gmra.mxu0 %vm200_vm1, %v177_v9  ;;  %541 = vmatmul.mubr.msk.f32.gmra.mxu1 %vm200_vm1, %v185_v10 }
  0x18   : > { %531 = vmatprep.mubr.msk.f32.mxu0 %vm200_vm1, %v178_v11  ;;  %543 = vmatprep.mubr.msk.f32.mxu1 %vm200_vm1, %v186_v12 }
  0x1b   : > { %532 = vmatmul.mubr.msk.f32.gmra.mxu0 %vm200_vm1, %v179_v13  ;;  %544 = vmatmul.mubr.msk.f32.gmra.mxu1 %vm200_vm1, %v187_v14 }
  0x1c   : > { %534 = vmatprep.mubr.msk.f32.mxu0 %vm200_vm1, %v180_v15  ;;  %546 = vmatprep.mubr.msk.f32.mxu1 %vm200_vm1, %v188_v16 }
  0x1f   : > { %535 = vmatmul.mubr.msk.f32.gmra.mxu0 %vm200_vm1, %v181_v17  ;;  %547 = vmatmul.mubr.msk.f32.gmra.mxu1 %vm200_vm1, %v189_v18 }
  0xd3   : > { %v527_v20 = vpop.f32.mrf.mxu0  ;;  %v539_v21 = vpop.f32.mrf.mxu1 }
  0xd4   : > { %v325_v22 = vadd.f32 %v527_v20, %v480_v19  ;;  %v365_v23 = vadd.f32 %v539_v21, %v480_v19 }
  0xd5   : > { %v319_v24 = vpop.f32.mrf.mxu0  ;;  %v359_v25 = vpop.f32.mrf.mxu1 }
  0xd6   : > { %400 = vst.msk [vmem:[%s640_s29 + $0x8] sm:$0xff] %vm398_vm2, %v325_v22  ;;  %408 = vst.msk [vmem:[%s640_s29 + $0x48] sm:$0xff] %vm398_vm2, %v365_v23  ;;  %v320_v26 = vadd.f32 %v480_v19, %v319_v24  ;;  %v360_v27 = vadd.f32 %v480_v19, %v359_v25 }
  0xd7   : > { %v530_v28 = vpop.f32.mrf.mxu0  ;;  %v542_v29 = vpop.f32.mrf.mxu1 }
  0xd8   : > { %399 = vst.msk [vmem:[%s640_s29] sm:$0xff] %vm398_vm2, %v320_v26  ;;  %407 = vst.msk [vmem:[%s640_s29 + $0x40] sm:$0xff] %vm398_vm2, %v360_v27  ;;  %v335_v30 = vadd.f32 %v530_v28, %v480_v19  ;;  %v375_v31 = vadd.f32 %v542_v29, %v480_v19 }
  0xd9   : > { %v329_v32 = vpop.f32.mrf.mxu0  ;;  %v369_v33 = vpop.f32.mrf.mxu1 }
  0xda   : > { %402 = vst.msk [vmem:[%s640_s29 + $0x18] sm:$0xff] %vm398_vm2, %v335_v30  ;;  %410 = vst.msk [vmem:[%s640_s29 + $0x58] sm:$0xff] %vm398_vm2, %v375_v31  ;;  %v330_v34 = vadd.f32 %v480_v19, %v329_v32  ;;  %v370_v35 = vadd.f32 %v480_v19, %v369_v33 }
  0xdb   : > { %v533_v36 = vpop.f32.mrf.mxu0  ;;  %v545_v37 = vpop.f32.mrf.mxu1 }
  0xdc   : > { %401 = vst.msk [vmem:[%s640_s29 + $0x10] sm:$0xff] %vm398_vm2, %v330_v34  ;;  %409 = vst.msk [vmem:[%s640_s29 + $0x50] sm:$0xff] %vm398_vm2, %v370_v35  ;;  %v345_v38 = vadd.f32 %v533_v36, %v480_v19  ;;  %v385_v39 = vadd.f32 %v545_v37, %v480_v19 }
  0xdd   : > { %v339_v40 = vpop.f32.mrf.mxu0  ;;  %v379_v41 = vpop.f32.mrf.mxu1 }
  0xde   : > { %404 = vst.msk [vmem:[%s640_s29 + $0x28] sm:$0xff] %vm398_vm2, %v345_v38  ;;  %412 = vst.msk [vmem:[%s640_s29 + $0x68] sm:$0xff] %vm398_vm2, %v385_v39  ;;  %v340_v42 = vadd.f32 %v480_v19, %v339_v40  ;;  %v380_v43 = vadd.f32 %v480_v19, %v379_v41 }
  0xdf   : > { %v536_v44 = vpop.f32.mrf.mxu0  ;;  %v548_v45 = vpop.f32.mrf.mxu1 }
  0xe0   : > { %403 = vst.msk [vmem:[%s640_s29 + $0x20] sm:$0xff] %vm398_vm2, %v340_v42  ;;  %411 = vst.msk [vmem:[%s640_s29 + $0x60] sm:$0xff] %vm398_vm2, %v380_v43  ;;  %v355_v46 = vadd.f32 %v536_v44, %v480_v19  ;;  %v395_v47 = vadd.f32 %v548_v45, %v480_v19 }
  0xe1   : > { %v349_v48 = vpop.f32.mrf.mxu0  ;;  %v389_v49 = vpop.f32.mrf.mxu1 }
  0xe2   : > { %406 = vst.msk [vmem:[%s640_s29 + $0x38] sm:$0xff] %vm398_vm2, %v355_v46  ;;  %414 = vst.msk [vmem:[%s640_s29 + $0x78] sm:$0xff] %vm398_vm2, %v395_v47  ;;  %v350_v50 = vadd.f32 %v480_v19, %v349_v48  ;;  %v390_v51 = vadd.f32 %v480_v19, %v389_v49 }
  0xe4   : > { %405 = vst.msk [vmem:[%s640_s29 + $0x30] sm:$0xff] %vm398_vm2, %v350_v50  ;;  %413 = vst.msk [vmem:[%s640_s29 + $0x70] sm:$0xff] %vm398_vm2, %v390_v51 }
  0xe5 PF: > { %s13_s12 = sadd.s32 1, %s569_s12  }
  0xe6   : > { %p10_p4 = scmp.ge.s32.totalorder %s13_s12, 4  }
  0xe8   :  { %12 = sbr.rel (!%p10_p4) target bundleno = 1 (0x1), region = 62 }

// kernel: liif_forward.3
= control target key start
LH: loop header
LB: loop body
LE: loop exit
PB: predicated region body
PF: predicated region fallthrough
CT: control target
= control target key end

     0   :  { %s3576_s27 = smov 0   ;;  %s3578_s28 = smov 0   ;;  %s4600_s0 = inlined_call_operand.vmem [shape: bf16[4,256,148], index: 0, kind: input, shape index: {}]   ;;  %s4601_s1 = inlined_call_operand.vmem [shape: f32[256,4], index: 1, kind: input, shape index: {}]   ;;  %s4602_s2 = inlined_call_operand.vmem [shape: bf16[148,128], index: 2, kind: input, shape index: {}]   ;;  %s4603_s3 = inlined_call_operand.vmem [shape: f32[1,128], index: 3, kind: input, shape index: {}]   ;;  %s4604_s4 = inlined_call_operand.vmem [shape: bf16[128,128], index: 4, kind: input, shape index: {}]   ;;  %s4605_s5 = inlined_call_operand.vmem [shape: f32[1,128], index: 5, kind: input, shape index: {}]   ;;  %s4606_s6 = inlined_call_operand.vmem [shape: bf16[128,128], index: 6, kind: input, shape index: {}]   ;;  %s4607_s7 = inlined_call_operand.vmem [shape: f32[1,128], index: 7, kind: input, shape index: {}]   ;;  %s4608_s8 = inlined_call_operand.vmem [shape: f32[256,3], index: 8, kind: output, shape index: {}]  }
   0x1   :  { %s3580_s29 = smov 0  }
   0x2 LB: > { %s2929_s30 = sadd.s32 4294967295, %s3525_s29   ;;  %s3593_s9 = sadd.s32 1, %s3525_s29   ;;  %s3525_s29 = sphi %s3580_s29, %s4615_s29   ;;  %s3521_s28 = sphi %s3578_s28, %s4614_s28   ;;  %s3517_s27 = sphi %s3576_s27, %s4613_s27  }
   0x3   : > { %s22_s10 = ssub.s32 %s3525_s29, %s3593_s9  ;;  %s25_s11 = sadd.s32 1, %s3521_s28 }
   0x4   : > { %p23_p0 = scmp.eq.s32.totalorder %s22_s10, 0  ;;  %p32_p1 = scmp.ne.s32.totalorder %s3521_s28, %s3517_s27 }
   0x5   : > { %p33_p2 = scmp.eq.s32.totalorder %s3525_s29, 0  ;;  %p2932_p4 = scmp.ge.s32.totalorder %s3525_s29, 2 }
   0x6   : > { %s3602_s12 = scalar_select %p23_p0, %s3521_s28, %s25_s11  }
   0x7   : > { %p34_p3 = por %p33_p2, %p32_p1  ;;  %254 = sbr.rel (%p2932_p4) target bundleno = 48 (0x30), region = 40 }
   0xc   : > { %257 = sbr.rel (!%p34_p3) target bundleno = 48 (0x30), region = 44  ;;  %s259_s13 = sand.u32 (%p34_p3), 1, %s3521_s28  }
   0xd   : > { %s3071_s14 = sshll.u32 (%p34_p3), %s3525_s29, 7  ;;  %s2933_s15 = sshll.u32 (%p34_p3), %s259_s13, 9 }
   0xe   : > { %s3610_s18 = scalar_lea.vmem (%p34_p3), %s4600_s0, %s3071_s14  ;;  %s3615_s19 = scalar_lea.vmem (%p34_p3), [#allocation2], %s2933_s15 }
   0xf   : > { %v420_v0 = vld [vmem:[%s3610_s18] sm:$0xff] (%p34_p3)  ;;  %v422_v1 = vld [vmem:[%s3610_s18 + $0x8] sm:$0xff] (%p34_p3)  ;;  %v424_v2 = vld [vmem:[%s3610_s18 + $0x10] sm:$0xff] (%p34_p3) }
  0x10   : > { %421 = vst [vmem:[%s3615_s19] sm:$0xff] (%p34_p3), %v420_v0  ;;  %423 = vst [vmem:[%s3615_s19 + $0x8] sm:$0xff] (%p34_p3), %v422_v1  ;;  %v426_v3 = vld [vmem:[%s3610_s18 + $0x18] sm:$0xff] (%p34_p3)  ;;  %v428_v4 = vld [vmem:[%s3610_s18 + $0x20] sm:$0xff] (%p34_p3) }
  0x11   : > { %425 = vst [vmem:[%s3615_s19 + $0x10] sm:$0xff] %v424_v2  ;;  %v430_v5 = vld [vmem:[%s3610_s18 + $0x28] sm:$0xff]  ;;  %427 = vst [vmem:[%s3615_s19 + $0x18] sm:$0xff] %v426_v3  ;;  %v432_v6 = vld [vmem:[%s3610_s18 + $0x30] sm:$0xff] }
  0x12   : > { %429 = vst [vmem:[%s3615_s19 + $0x20] sm:$0xff] %v428_v4  ;;  %431 = vst [vmem:[%s3615_s19 + $0x28] sm:$0xff] %v430_v5  ;;  %v434_v7 = vld [vmem:[%s3610_s18 + $0x38] sm:$0xff]  ;;  %v436_v8 = vld [vmem:[%s3610_s18 + $0x40] sm:$0xff] }
  0x13   : > { %433 = vst [vmem:[%s3615_s19 + $0x30] sm:$0xff] %v432_v6  ;;  %435 = vst [vmem:[%s3615_s19 + $0x38] sm:$0xff] %v434_v7  ;;  %v438_v9 = vld [vmem:[%s3610_s18 + $0x48] sm:$0xff]  ;;  %v440_v10 = vld [vmem:[%s3610_s18 + $0x50] sm:$0xff] }
  0x14   : > { %437 = vst [vmem:[%s3615_s19 + $0x40] sm:$0xff] %v436_v8  ;;  %v442_v11 = vld [vmem:[%s3610_s18 + $0x58] sm:$0xff]  ;;  %439 = vst [vmem:[%s3615_s19 + $0x48] sm:$0xff] %v438_v9  ;;  %v444_v12 = vld [vmem:[%s3610_s18 + $0x60] sm:$0xff] }
  0x15   : > { %441 = vst [vmem:[%s3615_s19 + $0x50] sm:$0xff] %v440_v10  ;;  %443 = vst [vmem:[%s3615_s19 + $0x58] sm:$0xff] %v442_v11  ;;  %v446_v13 = vld [vmem:[%s3610_s18 + $0x68] sm:$0xff]  ;;  %v448_v14 = vld [vmem:[%s3610_s18 + $0x70] sm:$0xff] }
  0x16   : > { %445 = vst [vmem:[%s3615_s19 + $0x60] sm:$0xff] %v444_v12  ;;  %447 = vst [vmem:[%s3615_s19 + $0x68] sm:$0xff] %v446_v13  ;;  %v450_v15 = vld [vmem:[%s3610_s18 + $0x78] sm:$0xff]  ;;  %v452_v16 = vld [vmem:[%s3610_s18 + $0x100] sm:$0xff] }
  0x17   : > { %449 = vst [vmem:[%s3615_s19 + $0x70] sm:$0xff] %v448_v14  ;;  %v454_v17 = vld [vmem:[%s3610_s18 + $0x108] sm:$0xff]  ;;  %451 = vst [vmem:[%s3615_s19 + $0x78] sm:$0xff] %v450_v15  ;;  %v456_v18 = vld [vmem:[%s3610_s18 + $0x110] sm:$0xff] }
  0x18   : > { %453 = vst [vmem:[%s3615_s19 + $0x80] sm:$0xff] %v452_v16  ;;  %455 = vst [vmem:[%s3615_s19 + $0x88] sm:$0xff] %v454_v17  ;;  %v458_v19 = vld [vmem:[%s3610_s18 + $0x118] sm:$0xff]  ;;  %v460_v20 = vld [vmem:[%s3610_s18 + $0x120] sm:$0xff] }
  0x19   : > { %457 = vst [vmem:[%s3615_s19 + $0x90] sm:$0xff] %v456_v18  ;;  %459 = vst [vmem:[%s3615_s19 + $0x98] sm:$0xff] %v458_v19  ;;  %v462_v21 = vld [vmem:[%s3610_s18 + $0x128] sm:$0xff]  ;;  %v464_v22 = vld [vmem:[%s3610_s18 + $0x130] sm:$0xff] }
  0x1a   : > { %461 = vst [vmem:[%s3615_s19 + $0xa0] sm:$0xff] %v460_v20  ;;  %v466_v23 = vld [vmem:[%s3610_s18 + $0x138] sm:$0xff]  ;;  %463 = vst [vmem:[%s3615_s19 + $0xa8] sm:$0xff] %v462_v21  ;;  %v468_v24 = vld [vmem:[%s3610_s18 + $0x140] sm:$0xff] }
  0x1b   : > { %465 = vst [vmem:[%s3615_s19 + $0xb0] sm:$0xff] %v464_v22  ;;  %467 = vst [vmem:[%s3615_s19 + $0xb8] sm:$0xff] %v466_v23  ;;  %v470_v25 = vld [vmem:[%s3610_s18 + $0x148] sm:$0xff]  ;;  %v472_v26 = vld [vmem:[%s3610_s18 + $0x150] sm:$0xff] }
  0x1c   : > { %469 = vst [vmem:[%s3615_s19 + $0xc0] sm:$0xff] %v468_v24  ;;  %471 = vst [vmem:[%s3615_s19 + $0xc8] sm:$0xff] %v470_v25  ;;  %v474_v27 = vld [vmem:[%s3610_s18 + $0x158] sm:$0xff]  ;;  %v476_v28 = vld [vmem:[%s3610_s18 + $0x160] sm:$0xff] }
  0x1d   : > { %473 = vst [vmem:[%s3615_s19 + $0xd0] sm:$0xff] %v472_v26  ;;  %v478_v29 = vld [vmem:[%s3610_s18 + $0x168] sm:$0xff]  ;;  %475 = vst [vmem:[%s3615_s19 + $0xd8] sm:$0xff] %v474_v27  ;;  %v480_v30 = vld [vmem:[%s3610_s18 + $0x170] sm:$0xff] }
  0x1e   : > { %477 = vst [vmem:[%s3615_s19 + $0xe0] sm:$0xff] %v476_v28  ;;  %479 = vst [vmem:[%s3615_s19 + $0xe8] sm:$0xff] %v478_v29  ;;  %v482_v31 = vld [vmem:[%s3610_s18 + $0x178] sm:$0xff]  ;;  %v484_v32 = vld [vmem:[%s3610_s18 + $0x200] sm:$0xff] }
  0x1f   : > { %481 = vst [vmem:[%s3615_s19 + $0xf0] sm:$0xff] %v480_v30  ;;  %483 = vst [vmem:[%s3615_s19 + $0xf8] sm:$0xff] %v482_v31  ;;  %v486_v33 = vld [vmem:[%s3610_s18 + $0x208] sm:$0xff]  ;;  %v488_v34 = vld [vmem:[%s3610_s18 + $0x210] sm:$0xff] }
  0x20   : > { %485 = vst [vmem:[%s3615_s19 + $0x100] sm:$0xff] %v484_v32  ;;  %v490_v35 = vld [vmem:[%s3610_s18 + $0x218] sm:$0xff]  ;;  %487 = vst [vmem:[%s3615_s19 + $0x108] sm:$0xff] %v486_v33  ;;  %v492_v36 = vld [vmem:[%s3610_s18 + $0x220] sm:$0xff] }
  0x21   : > { %489 = vst [vmem:[%s3615_s19 + $0x110] sm:$0xff] %v488_v34  ;;  %491 = vst [vmem:[%s3615_s19 + $0x118] sm:$0xff] %v490_v35  ;;  %v494_v37 = vld [vmem:[%s3610_s18 + $0x228] sm:$0xff]  ;;  %v496_v38 = vld [vmem:[%s3610_s18 + $0x230] sm:$0xff] }
  0x22   : > { %493 = vst [vmem:[%s3615_s19 + $0x120] sm:$0xff] %v492_v36  ;;  %495 = vst [vmem:[%s3615_s19 + $0x128] sm:$0xff] %v494_v37  ;;  %v498_v39 = vld [vmem:[%s3610_s18 + $0x238] sm:$0xff]  ;;  %v500_v40 = vld [vmem:[%s3610_s18 + $0x240] sm:$0xff] }
  0x23   : > { %497 = vst [vmem:[%s3615_s19 + $0x130] sm:$0xff] %v496_v38  ;;  %v502_v41 = vld [vmem:[%s3610_s18 + $0x248] sm:$0xff]  ;;  %499 = vst [vmem:[%s3615_s19 + $0x138] sm:$0xff] %v498_v39  ;;  %v504_v42 = vld [vmem:[%s3610_s18 + $0x250] sm:$0xff] }
  0x24   : > { %501 = vst [vmem:[%s3615_s19 + $0x140] sm:$0xff] %v500_v40  ;;  %503 = vst [vmem:[%s3615_s19 + $0x148] sm:$0xff] %v502_v41  ;;  %v506_v43 = vld [vmem:[%s3610_s18 + $0x258] sm:$0xff]  ;;  %v508_v44 = vld [vmem:[%s3610_s18 + $0x260] sm:$0xff] }
  0x25   : > { %505 = vst [vmem:[%s3615_s19 + $0x150] sm:$0xff] %v504_v42  ;;  %507 = vst [vmem:[%s3615_s19 + $0x158] sm:$0xff] %v506_v43  ;;  %v510_v45 = vld [vmem:[%s3610_s18 + $0x268] sm:$0xff]  ;;  %v512_v46 = vld [vmem:[%s3610_s18 + $0x270] sm:$0xff] }
  0x26   : > { %509 = vst [vmem:[%s3615_s19 + $0x160] sm:$0xff] %v508_v44  ;;  %v514_v47 = vld [vmem:[%s3610_s18 + $0x278] sm:$0xff]  ;;  %511 = vst [vmem:[%s3615_s19 + $0x168] sm:$0xff] %v510_v45  ;;  %v516_v48 = vld [vmem:[%s3610_s18 + $0x300] sm:$0xff] }
  0x27   : > { %513 = vst [vmem:[%s3615_s19 + $0x170] sm:$0xff] %v512_v46  ;;  %515 = vst [vmem:[%s3615_s19 + $0x178] sm:$0xff] %v514_v47  ;;  %v518_v49 = vld [vmem:[%s3610_s18 + $0x308] sm:$0xff]  ;;  %v520_v50 = vld [vmem:[%s3610_s18 + $0x310] sm:$0xff] }
  0x28   : > { %517 = vst [vmem:[%s3615_s19 + $0x180] sm:$0xff] %v516_v48  ;;  %519 = vst [vmem:[%s3615_s19 + $0x188] sm:$0xff] %v518_v49  ;;  %v522_v51 = vld [vmem:[%s3610_s18 + $0x318] sm:$0xff]  ;;  %v524_v52 = vld [vmem:[%s3610_s18 + $0x320] sm:$0xff] }
  0x29   : > { %521 = vst [vmem:[%s3615_s19 + $0x190] sm:$0xff] %v520_v50  ;;  %v526_v53 = vld [vmem:[%s3610_s18 + $0x328] sm:$0xff]  ;;  %523 = vst [vmem:[%s3615_s19 + $0x198] sm:$0xff] %v522_v51  ;;  %v528_v54 = vld [vmem:[%s3610_s18 + $0x330] sm:$0xff] }
  0x2a   : > { %525 = vst [vmem:[%s3615_s19 + $0x1a0] sm:$0xff] %v524_v52  ;;  %527 = vst [vmem:[%s3615_s19 + $0x1a8] sm:$0xff] %v526_v53  ;;  %v530_v55 = vld [vmem:[%s3610_s18 + $0x338] sm:$0xff]  ;;  %v532_v56 = vld [vmem:[%s3610_s18 + $0x340] sm:$0xff] }
  0x2b   : > { %529 = vst [vmem:[%s3615_s19 + $0x1b0] sm:$0xff] %v528_v54  ;;  %531 = vst [vmem:[%s3615_s19 + $0x1b8] sm:$0xff] %v530_v55  ;;  %v534_v57 = vld [vmem:[%s3610_s18 + $0x348] sm:$0xff]  ;;  %v536_v58 = vld [vmem:[%s3610_s18 + $0x350] sm:$0xff] }
  0x2c   : > { %533 = vst [vmem:[%s3615_s19 + $0x1c0] sm:$0xff] %v532_v56  ;;  %v538_v59 = vld [vmem:[%s3610_s18 + $0x358] sm:$0xff]  ;;  %535 = vst [vmem:[%s3615_s19 + $0x1c8] sm:$0xff] %v534_v57  ;;  %v540_v60 = vld [vmem:[%s3610_s18 + $0x360] sm:$0xff] }
  0x2d   : > { %537 = vst [vmem:[%s3615_s19 + $0x1d0] sm:$0xff] %v536_v58  ;;  %539 = vst [vmem:[%s3615_s19 + $0x1d8] sm:$0xff] %v538_v59  ;;  %v542_v61 = vld [vmem:[%s3610_s18 + $0x368] sm:$0xff]  ;;  %v544_v62 = vld [vmem:[%s3610_s18 + $0x370] sm:$0xff] }
  0x2e   : > { %541 = vst [vmem:[%s3615_s19 + $0x1e0] sm:$0xff] %v540_v60  ;;  %543 = vst [vmem:[%s3615_s19 + $0x1e8] sm:$0xff] %v542_v61  ;;  %v546_v63 = vld [vmem:[%s3610_s18 + $0x378] sm:$0xff] }
  0x2f   : > { %545 = vst [vmem:[%s3615_s19 + $0x1f0] sm:$0xff] %v544_v62  ;;  %547 = vst [vmem:[%s3615_s19 + $0x1f8] sm:$0xff] %v546_v63 }
  0x30 PF: > { %p2937_p5 = scmp.ge.s32.totalorder %s3525_s29, 1  ;;  %p561_p6 = scmp.lt.s32.totalorder %s3525_s29, 3 }
  0x32   : > { %p562_p7 = pnand %p2937_p5, %p561_p6 }
  0x34   : > { %565 = sbr.rel (%p562_p7) target bundleno = 961 (0x3c1), region = 86 }
  0x39   : > { %v3348_v0 = vld [vmem:[%s4602_s2 + $0x38] sm:$0xff]   ;;  %v3527_v1 = vmov 0   ;;  %v3349_v2 = vld [vmem:[%s4602_s2 + $0x30] sm:$0xff]   ;;  %s568_s24 = sand.u32 1, %s3517_s27   ;;  %v3350_v3 = vld [vmem:[%s4602_s2 + $0x28] sm:$0xff]   ;;  %vm1152_vm0 = vcmask 162816  }
  0x3a   : > { %1253 = vmatprep.subr.bf16.mxu0 %v3527_v1  ;;  %3341 = vset.pattern.permute.xlu1 %v3527_v1  ;;  %s2938_s25 = sshll.u32 %s568_s24, 9  ;;  %v3351_v4 = vld [vmem:[%s4602_s2 + $0x20] sm:$0xff]   ;;  %v3352_v6 = vld [vmem:[%s4602_s2 + $0x18] sm:$0xff]   ;;  %v3353_v7 = vld [vmem:[%s4602_s2 + $0x10] sm:$0xff]   ;;  %vm1249_vm1 = vcmask 1041408   ;;  %s2939_s26 = sshll.u32 %s2929_s30, 4 }
  0x3b   : > { %1254 = vmatpush1.bf16.msra.mxu0 %v3348_v0  ;;  %3340 = vset.pattern.permute.xlu0 %v3527_v1  ;;  %s3754_s11 = scalar_lea.vmem [#allocation2], %s2938_s25  ;;  %v3354_v8 = vld [vmem:[%s4602_s2 + $0x8] sm:$0xff]   ;;  %v3355_v9 = vld [vmem:[%s4602_s2] sm:$0xff]   ;;  %v3427_v27 = vld [vmem:[%s4604_s4 + $0x38] sm:$0xff]   ;;  %p608_p8 = scmp.lt.s32.totalorder %s2939_s26, 31  ;;  %vm636_vm2 = vcmask 31744  }
  0x3c   : > { %1255 = vmatprep.subr.bf16.mxu0 %v3527_v1  ;;  %v3360_v5 = vld [vmem:[%s3754_s11 + $0x4] ss:$8 sps:$4 sm:$0xff]   ;;  %v3356_v10 = vld [vmem:[%s4602_s2 + $0x48] ss:$0 sps:$4 sm:$0x33]   ;;  %v3430_v28 = vld [vmem:[%s4604_s4 + $0x30] sm:$0xff]   ;;  %3152 = vmatprep.subr.bf16.mxu1 %v3427_v27 }
  0x3d   : > { %3018 = vmatprep.mubr.msk.bf16.mxu0 %vm1152_vm0, %v3360_v5  ;;  %v1251_v11 = vsel %vm1249_vm1, %v3356_v10, 0  ;;  %v3357_v12 = vld [vmem:[%s4602_s2 + $0x40] sm:$0xff]   ;;  %v3361_v14 = vld [vmem:[%s3754_s11 + $0x14] ss:$8 sps:$4 sm:$0xff]   ;;  %v3363_v15 = vld [vmem:[%s3754_s11 + $0x10] ss:$8 sps:$4 sm:$0xff]   ;;  %3153 = vmatpush3.bf16.msra.mxu1 %v3427_v27 }
  0x3e   : > { %v3358_v13 = vld [vmem:[%s3754_s11] ss:$8 sps:$4 sm:$0xff]   ;;  %v3364_v16 = vld [vmem:[%s3754_s11 + $0x24] ss:$8 sps:$4 sm:$0xff]   ;;  %v3367_v18 = vld [vmem:[%s3754_s11 + $0x34] ss:$8 sps:$4 sm:$0xff]   ;;  %3154 = vmatprep.subr.bf16.mxu1 %v3430_v28 }
  0x3f   : > { %1256 = vmatpush1.bf16.msra.mxu0 %v3349_v2  ;;  %v3366_v17 = vld [vmem:[%s3754_s11 + $0x20] ss:$8 sps:$4 sm:$0xff]   ;;  %v3369_v19 = vld [vmem:[%s3754_s11 + $0x30] ss:$8 sps:$4 sm:$0xff]   ;;  %v3370_v20 = vld [vmem:[%s3754_s11 + $0x44] ss:$8 sps:$4 sm:$0xff]  }
  0x40   : > { %1257 = vmatprep.subr.bf16.mxu0 %v3527_v1  ;;  %v3372_v21 = vld [vmem:[%s3754_s11 + $0x40] ss:$8 sps:$4 sm:$0xff]   ;;  %v3373_v22 = vld [vmem:[%s3754_s11 + $0x54] ss:$8 sps:$4 sm:$0xff]   ;;  %v3375_v23 = vld [vmem:[%s3754_s11 + $0x50] ss:$8 sps:$4 sm:$0xff]  }
  0x41   : > { %v3376_v24 = vld [vmem:[%s3754_s11 + $0x64] ss:$8 sps:$4 sm:$0xff]   ;;  %v3378_v25 = vld [vmem:[%s3754_s11 + $0x60] ss:$8 sps:$4 sm:$0xff]   ;;  %v3379_v26 = vld [vmem:[%s3754_s11 + $0x74] ss:$8 sps:$4 sm:$0xff]   ;;  %3155 = vmatpush3.bf16.msra.mxu1 %v3430_v28 }
  0x42   : > { %v3381_v29 = vld [vmem:[%s3754_s11 + $0x70] ss:$8 sps:$4 sm:$0xff]   ;;  %v3382_v30 = vld [vmem:[%s3754_s11 + $0x84] ss:$8 sps:$4 sm:$0xff]   ;;  %v3384_v33 = vld [vmem:[%s3754_s11 + $0x80] ss:$8 sps:$4 sm:$0xff]  }
  0x43   : > { %1258 = vmatpush1.bf16.msra.mxu0 %v3350_v3  ;;  %v3432_v31 = vld [vmem:[%s4604_s4 + $0x28] sm:$0xff]   ;;  %v3435_v32 = vld [vmem:[%s4604_s4 + $0x20] sm:$0xff]   ;;  %v3385_v34 = vld [vmem:[%s3754_s11 + $0x94] ss:$8 sps:$4 sm:$0xff]   ;;  %s4617_s26 = smov (!%p608_p8, %s2939_s26), 31  ;;  %vm2838_vm3 = vcmask 23552  }
  0x44   : > { %1259 = vmatprep.subr.bf16.mxu0 %v3527_v1  ;;  %3156 = vmatprep.subr.bf16.mxu1 %v3432_v31  ;;  %v3437_v35 = vld [vmem:[%s4604_s4 + $0x18] sm:$0xff]   ;;  %v3388_v37 = vld [vmem:[%s3754_s11 + $0xa4] ss:$8 sps:$4 sm:$0xff]   ;;  %v3440_v38 = vld [vmem:[%s4604_s4 + $0x10] sm:$0xff]   ;;  %s2940_s10 = sshll.u32 %s4617_s26, 3 }
  0x45   : > { %3157 = vmatpush3.bf16.msra.mxu1 %v3432_v31  ;;  %v3387_v36 = vld [vmem:[%s3754_s11 + $0x90] ss:$8 sps:$4 sm:$0xff]   ;;  %v3442_v39 = vld [vmem:[%s4604_s4 + $0x8] sm:$0xff]   ;;  %v3391_v41 = vld [vmem:[%s3754_s11 + $0xb4] ss:$8 sps:$4 sm:$0xff]   ;;  %s3882_s27 = scalar_lea.vmem %s4601_s1, %s2940_s10  ;;  %s4492_s21 = scalar_lea.vmem %s4608_s8, %s2940_s10 }
  0x46   : > { %3158 = vmatprep.subr.bf16.mxu1 %v3435_v32  ;;  %v3390_v40 = vld [vmem:[%s3754_s11 + $0xa0] ss:$8 sps:$4 sm:$0xff]   ;;  %v3393_v43 = vld [vmem:[%s3754_s11 + $0xb0] ss:$8 sps:$4 sm:$0xff]   ;;  %v3394_v44 = vld [vmem:[%s3754_s11 + $0xc4] ss:$8 sps:$4 sm:$0xff]  }
  0x47   : > { %1260 = vmatpush1.bf16.msra.mxu0 %v3351_v4  ;;  %v3445_v42 = vld [vmem:[%s4604_s4] sm:$0xff]   ;;  %v3397_v46 = vld [vmem:[%s3754_s11 + $0xd4] ss:$8 sps:$4 sm:$0xff]   ;;  %v3399_v47 = vld [vmem:[%s3754_s11 + $0xd0] ss:$8 sps:$4 sm:$0xff]  }
  0x48   : > { %1261 = vmatprep.subr.bf16.mxu0 %v3527_v1  ;;  %v3396_v45 = vld [vmem:[%s3754_s11 + $0xc0] ss:$8 sps:$4 sm:$0xff]   ;;  %v3400_v48 = vld [vmem:[%s3754_s11 + $0xe4] ss:$8 sps:$4 sm:$0xff]   ;;  %v3403_v50 = vld [vmem:[%s3754_s11 + $0xf4] ss:$8 sps:$4 sm:$0xff]  }
  0x49   : > { %3159 = vmatpush3.bf16.msra.mxu1 %v3435_v32  ;;  %v3402_v49 = vld [vmem:[%s3754_s11 + $0xe0] ss:$8 sps:$4 sm:$0xff]   ;;  %v3405_v51 = vld [vmem:[%s3754_s11 + $0xf0] ss:$8 sps:$4 sm:$0xff]   ;;  %v3406_v52 = vld [vmem:[%s3754_s11 + $0x104] ss:$8 sps:$4 sm:$0xff]  }
  0x4a   : > { %3160 = vmatprep.subr.bf16.mxu1 %v3437_v35  ;;  %v3408_v53 = vld [vmem:[%s3754_s11 + $0x100] ss:$8 sps:$4 sm:$0xff]   ;;  %v3409_v54 = vld [vmem:[%s3754_s11 + $0x114] ss:$8 sps:$4 sm:$0xff]   ;;  %v3411_v55 = vld [vmem:[%s3754_s11 + $0x110] ss:$8 sps:$4 sm:$0xff]  }
  0x4b   : > { %1262 = vmatpush1.bf16.msra.mxu0 %v3352_v6  ;;  %v3412_v56 = vld [vmem:[%s3754_s11 + $0x124] ss:$8 sps:$4 sm:$0xff]   ;;  %v3414_v57 = vld [vmem:[%s3754_s11 + $0x120] ss:$8 sps:$4 sm:$0xff]   ;;  %v3415_v58 = vld [vmem:[%s3754_s11 + $0x134] ss:$8 sps:$4 sm:$0xff]  }
  0x4c   : > { %1263 = vmatprep.subr.bf16.mxu0 %v3527_v1  ;;  %v3417_v59 = vld [vmem:[%s3754_s11 + $0x130] ss:$8 sps:$4 sm:$0xff]   ;;  %v3418_v60 = vld [vmem:[%s3754_s11 + $0x144] ss:$8 sps:$4 sm:$0xff]   ;;  %v3420_v61 = vld [vmem:[%s3754_s11 + $0x140] ss:$8 sps:$4 sm:$0xff]  }
  0x4d   : > { %3161 = vmatpush3.bf16.msra.mxu1 %v3437_v35  ;;  %v3421_v62 = vld [vmem:[%s3754_s11 + $0x154] ss:$8 sps:$4 sm:$0xff]   ;;  %v3423_v63 = vld [vmem:[%s3754_s11 + $0x150] ss:$8 sps:$4 sm:$0xff]   ;;  %v3424_v0 = vld [vmem:[%s3754_s11 + $0x164] ss:$8 sps:$4 sm:$0xff]  }
  0x4e   : > { %3162 = vmatprep.subr.bf16.mxu1 %v3440_v38  ;;  %v3428_v2 = vld [vmem:[%s3754_s11 + $0x174] ss:$8 sps:$4 sm:$0xff]   ;;  %v3431_v3 = vld [vmem:[%s3754_s11 + $0x170] ss:$8 sps:$4 sm:$0xff]   ;;  %v3886_v4 = vld [vmem:[%s3882_s27] sm:$0xff] }
  0x4f   : > { %1264 = vmatpush1.bf16.msra.mxu0 %v3353_v7  ;;  %v3433_v5 = vld [vmem:[%s3754_s11 + $0x184] ss:$8 sps:$4 sm:$0xff]   ;;  %v637_v6 = vsel %vm636_vm2, %v3886_v4, 0.0  ;;  %v3899_v10 = vld [vmem:[%s3882_s27 + $0x10] sm:$0xff]  ;;  %v3446_v35 = vld [vmem:[%s3754_s11 + $0x1a0] ss:$8 sps:$4 sm:$0xff]  }
  0x50   : > { %1265 = vmatprep.subr.bf16.mxu0 %v3527_v1  ;;  %638 = vadd.xlane.f32.xlu0 %v637_v6  ;;  %v3892_v7 = vld [vmem:[%s3882_s27 + $0x8] sm:$0xff] }
  0x51   : > { %3163 = vmatpush3.bf16.msra.mxu1 %v3440_v38  ;;  %v3447_v38 = vld [vmem:[%s3754_s11 + $0x1b4] ss:$8 sps:$4 sm:$0xff]  }
  0x52   : > { %3164 = vmatprep.subr.bf16.mxu1 %v3442_v39 }
  0x53   : > { %1266 = vmatpush1.bf16.msra.mxu0 %v3354_v8  ;;  %v640_v8 = vsel %vm636_vm2, %v3892_v7, 0.0 }
  0x54   : > { %1267 = vmatprep.subr.bf16.mxu0 %v3527_v1  ;;  %641 = vadd.xlane.f32.xlu0 %v640_v8 }
  0x55   : > { %3165 = vmatpush3.bf16.msra.mxu1 %v3442_v39 }
  0x56   : > { %3166 = vmatprep.subr.bf16.mxu1 %v3445_v42 }
  0x57   : > { %1268 = vmatpush1.bf16.msra.mxu0 %v3355_v9  ;;  %v3436_v9 = vld [vmem:[%s3754_s11 + $0x180] ss:$8 sps:$4 sm:$0xff]  }
  0x58   : > { %1281 = vmatprep.subr.bf16.mxu0 %v3527_v1 }
  0x59   : > { %3167 = vmatpush3.bf16.msra.mxu1 %v3445_v42 }
  0x5b   : > { %1282 = vmatpush2.bf16.msra.mxu0 %v1251_v11  ;;  %v3438_v11 = vld [vmem:[%s3754_s11 + $0x194] ss:$8 sps:$4 sm:$0xff]  }
  0x5c   : > { %1283 = vmatprep.subr.bf16.mxu0 %v3527_v1  ;;  %v3426_v1 = vld [vmem:[%s3754_s11 + $0x160] ss:$8 sps:$4 sm:$0xff]  }
  0x5f   : > { %1284 = vmatpush2.bf16.msra.mxu0 %v3357_v12  ;;  %v643_v12 = vsel %vm636_vm2, %v3899_v10, 0.0 }
  0x60   : > { %644 = vadd.xlane.f32.xlu1 %v643_v12 }
  0x62   : > { %1286 = vmatmul.mubr.bf16.vlgmr.msra.gmra.mxu0 %v3358_v13  ;;  %v3907_v13 = vld [vmem:[%s4603_s3] ss:$0 sm:$0xff] }
  0x63   : > { %3019 = vmatprep.mubr.msk.bf16.mxu0 %vm1152_vm0, %v3361_v14 }
  0x6a   : > { %1294 = vmatmul.mubr.bf16.gmra.mxu0 %v3363_v15  ;;  %v3910_v15 = vld [vmem:[%s3882_s27 + $0x18] sm:$0xff] }
  0x6b   : > { %3020 = vmatprep.mubr.msk.bf16.mxu0 %vm1152_vm0, %v3364_v16  ;;  %v646_v16 = vsel %vm636_vm2, %v3910_v15, 0.0 }
  0x6c   : > { %647 = vadd.xlane.f32.xlu1 %v646_v16  ;;  %v3973_v16 = vld [vmem:[%s3882_s27 + $0x70] sm:$0xff] }
  0x72   : > { %1302 = vmatmul.mubr.bf16.gmra.mxu0 %v3366_v17 }
  0x73   : > { %3021 = vmatprep.mubr.msk.bf16.mxu0 %vm1152_vm0, %v3367_v18 }
  0x7a   : > { %1310 = vmatmul.mubr.bf16.gmra.mxu0 %v3369_v19 }
  0x7b   : > { %3022 = vmatprep.mubr.msk.bf16.mxu0 %vm1152_vm0, %v3370_v20  ;;  %v3441_v20 = vld [vmem:[%s3754_s11 + $0x190] ss:$8 sps:$4 sm:$0xff]  }
  0x82   : > { %1318 = vmatmul.mubr.bf16.gmra.mxu0 %v3372_v21  ;;  %v3918_v21 = vld [vmem:[%s3882_s27 + $0x20] sm:$0xff] }
  0x83   : > { %3023 = vmatprep.mubr.msk.bf16.mxu0 %vm1152_vm0, %v3373_v22 }
  0x8a   : > { %1326 = vmatmul.mubr.bf16.gmra.mxu0 %v3375_v23  ;;  %v3443_v23 = vld [vmem:[%s3754_s11 + $0x1a4] ss:$8 sps:$4 sm:$0xff]  }
  0x8b   : > { %3024 = vmatprep.mubr.msk.bf16.mxu0 %vm1152_vm0, %v3376_v24  ;;  %v649_v24 = vsel %vm636_vm2, %v3918_v21, 0.0 }
  0x8c   : > { %650 = vadd.xlane.f32.xlu0 %v649_v24  ;;  %v3455_v24 = vld [vmem:[%s3754_s11 + $0x1d0] ss:$8 sps:$4 sm:$0xff]  }
  0x92   : > { %1334 = vmatmul.mubr.bf16.gmra.mxu0 %v3378_v25 }
  0x93   : > { %3025 = vmatprep.mubr.msk.bf16.mxu0 %vm1152_vm0, %v3379_v26 }
  0x9a   : > { %1342 = vmatmul.mubr.bf16.gmra.mxu0 %v3381_v29  ;;  %v3925_v29 = vld [vmem:[%s3882_s27 + $0x28] sm:$0xff] }
  0x9b   : > { %3026 = vmatprep.mubr.msk.bf16.mxu0 %vm1152_vm0, %v3382_v30  ;;  %v652_v31 = vsel %vm636_vm2, %v3925_v29, 0.0 }
  0x9c   : > { %653 = vadd.xlane.f32.xlu1 %v652_v31 }
  0xa2   : > { %1350 = vmatmul.mubr.bf16.gmra.mxu0 %v3384_v33 }
  0xa3   : > { %3027 = vmatprep.mubr.msk.bf16.mxu0 %vm1152_vm0, %v3385_v34 }
  0xaa   : > { %1358 = vmatmul.mubr.bf16.gmra.mxu0 %v3387_v36  ;;  %v3933_v36 = vld [vmem:[%s3882_s27 + $0x30] sm:$0xff] }
  0xab   : > { %3028 = vmatprep.mubr.msk.bf16.mxu0 %vm1152_vm0, %v3388_v37  ;;  %v655_v39 = vsel %vm636_vm2, %v3933_v36, 0.0 }
  0xac   : > { %656 = vadd.xlane.f32.xlu0 %v655_v39 }
  0xb2   : > { %1366 = vmatmul.mubr.bf16.gmra.mxu0 %v3390_v40 }
  0xb3   : > { %3029 = vmatprep.mubr.msk.bf16.mxu0 %vm1152_vm0, %v3391_v41 }
  0xba   : > { %1374 = vmatmul.mubr.bf16.gmra.mxu0 %v3393_v43 }
  0xbb   : > { %3030 = vmatprep.mubr.msk.bf16.mxu0 %vm1152_vm0, %v3394_v44  ;;  %v3940_v44 = vld [vmem:[%s3882_s27 + $0x38] sm:$0xff] }
  0xc2   : > { %1382 = vmatmul.mubr.bf16.gmra.mxu0 %v3396_v45 }
  0xc3   : > { %3031 = vmatprep.mubr.msk.bf16.mxu0 %vm1152_vm0, %v3397_v46  ;;  %v658_v46 = vsel %vm636_vm2, %v3940_v44, 0.0 }
  0xc4   : > { %659 = vadd.xlane.f32.xlu1 %v658_v46 }
  0xca   : > { %1390 = vmatmul.mubr.bf16.gmra.mxu0 %v3399_v47 }
  0xcb   : > { %3032 = vmatprep.mubr.msk.bf16.mxu0 %vm1152_vm0, %v3400_v48 }
  0xd2   : > { %1398 = vmatmul.mubr.bf16.gmra.mxu0 %v3402_v49 }
  0xd3   : > { %3033 = vmatprep.mubr.msk.bf16.mxu0 %vm1152_vm0, %v3403_v50  ;;  %v3449_v50 = vld [vmem:[%s3754_s11 + $0x1b0] ss:$8 sps:$4 sm:$0xff]  }
  0xda   : > { %1406 = vmatmul.mubr.bf16.gmra.mxu0 %v3405_v51  ;;  %v3948_v51 = vld [vmem:[%s3882_s27 + $0x40] sm:$0xff] }
  0xdb   : > { %3034 = vmatprep.mubr.msk.bf16.mxu0 %vm1152_vm0, %v3406_v52 }
  0xe2   : > { %1414 = vmatmul.mubr.bf16.gmra.mxu0 %v3408_v53  ;;  %v3450_v53 = vld [vmem:[%s3754_s11 + $0x1c4] ss:$8 sps:$4 sm:$0xff]  }
  0xe3   : > { %3035 = vmatprep.mubr.msk.bf16.mxu0 %vm1152_vm0, %v3409_v54  ;;  %v661_v54 = vsel %vm636_vm2, %v3948_v51, 0.0 }
  0xe4   : > { %662 = vadd.xlane.f32.xlu0 %v661_v54 }
  0xea   : > { %1422 = vmatmul.mubr.bf16.gmra.mxu0 %v3411_v55 }
  0xeb   : > { %3036 = vmatprep.mubr.msk.bf16.mxu0 %vm1152_vm0, %v3412_v56 }
  0xf2   : > { %1430 = vmatmul.mubr.bf16.gmra.mxu0 %v3414_v57 }
  0xf3   : > { %3037 = vmatprep.mubr.msk.bf16.mxu0 %vm1152_vm0, %v3415_v58 }
  0xfa   : > { %1438 = vmatmul.mubr.bf16.gmra.mxu0 %v3417_v59  ;;  %v3955_v59 = vld [vmem:[%s3882_s27 + $0x50] sm:$0xff] }
  0xfb   : > { %3038 = vmatprep.mubr.msk.bf16.mxu0 %vm1152_vm0, %v3418_v60 }
 0x102   : > { %1446 = vmatmul.mubr.bf16.gmra.mxu0 %v3420_v61  ;;  %v667_v61 = vsel %vm636_vm2, %v3955_v59, 0.0 }
 0x103   : > { %3039 = vmatprep.mubr.msk.bf16.mxu0 %vm1152_vm0, %v3421_v62  ;;  %668 = vadd.xlane.f32.xlu0 %v667_v61 }
 0x10a   : > { %1454 = vmatmul.mubr.bf16.gmra.mxu0 %v3423_v63 }
 0x10b   : > { %3040 = vmatprep.mubr.msk.bf16.mxu0 %vm1152_vm0, %v3424_v0 }
 0x112   : > { %1462 = vmatmul.mubr.bf16.gmra.mxu0 %v3426_v1  ;;  %v3452_v1 = vld [vmem:[%s3754_s11 + $0x1c0] ss:$8 sps:$4 sm:$0xff]  }
 0x113   : > { %3041 = vmatprep.mubr.msk.bf16.mxu0 %vm1152_vm0, %v3428_v2  ;;  %v3963_v2 = vld [vmem:[%s3882_s27 + $0x60] sm:$0xff] }
 0x114   : > { %v673_v6 = vsel %vm636_vm2, %v3963_v2, 0.0 }
 0x115   : > { %674 = vadd.xlane.f32.xlu0 %v673_v6 }
 0x11a   : > { %1470 = vmatmul.mubr.bf16.gmra.mxu0 %v3431_v3 }
 0x11b   : > { %3042 = vmatprep.mubr.msk.bf16.mxu0 %vm1152_vm0, %v3433_v5  ;;  %v3453_v5 = vld [vmem:[%s3754_s11 + $0x1d4] ss:$8 sps:$4 sm:$0xff]  }
 0x122   : > { %v1287_v14 = vpop.f32.mrf.mxu0  ;;  %1478 = vmatmul.mubr.bf16.gmra.mxu0 %v3436_v9 }
 0x123   : > { %3043 = vmatprep.mubr.msk.bf16.mxu0 %vm1152_vm0, %v3438_v11  ;;  %v1288_v18 = vadd.f32 %v3907_v13, %v1287_v14  ;;  %v3970_v14 = vld [vmem:[%s3882_s27 + $0x48] sm:$0xff] }
 0x124   : > { %v1289_v17 = vpop.f32.mrf.mxu0 }
 0x125   : > { %v1542_v26 = vmax.f32 %v1288_v18, 0.0  ;;  %v664_v18 = vsel %vm636_vm2, %v3970_v14, 0.0 }
 0x126   : > { %v1290_v19 = vpop.f32.mrf.mxu0  ;;  %665 = vadd.xlane.f32.xlu1 %v664_v18 }
 0x127   : > { %v1291_v22 = vadd.f32 %v3907_v13, %v1290_v19  ;;  %v679_v19 = vsel %vm636_vm2, %v3973_v16, 0.0 }
 0x128   : > { %v1292_v25 = vpop.f32.mrf.mxu0  ;;  %680 = vadd.xlane.f32.xlu0 %v679_v19 }
 0x129   : > { %v1543_v27 = vmax.f32 %v1291_v22, 0.0  ;;  %v3983_v25 = vld [vmem:[%s3882_s27 + $0x58] sm:$0xff] }
 0x12a   : > { %v1295_v28 = vpop.f32.mrf.mxu0  ;;  %1486 = vmatmul.mubr.bf16.gmra.mxu0 %v3441_v20 }
 0x12b   : > { %v1606_v30 = vpack.c.bf16 %v1543_v27, %v1542_v26  ;;  %3044 = vmatprep.mubr.msk.bf16.mxu0 %vm1152_vm0, %v3443_v23  ;;  %v1296_v33 = vadd.f32 %v3907_v13, %v1295_v28  ;;  %v3456_v27 = vld [vmem:[%s3754_s11 + $0x1e4] ss:$8 sps:$4 sm:$0xff]   ;;  %v670_v28 = vsel %vm636_vm2, %v3983_v25, 0.0 }
 0x12c   : > { %v1297_v32 = vpop.f32.mrf.mxu0  ;;  %671 = vadd.xlane.f32.xlu1 %v670_v28 }
 0x12d   : > { %3168 = vmatprep.mubr.bf16.mxu1 %v1606_v30  ;;  %v1544_v41 = vmax.f32 %v1296_v33, 0.0 }
 0x12e   : > { %v1298_v34 = vpop.f32.mrf.mxu0 }
 0x12f   : > { %v1299_v37 = vadd.f32 %v3907_v13, %v1298_v34  ;;  %v3990_v34 = vld [vmem:[%s3882_s27 + $0x68] sm:$0xff] }
 0x130   : > { %v1300_v40 = vpop.f32.mrf.mxu0 }
 0x131   : > { %v1545_v42 = vmax.f32 %v1299_v37, 0.0  ;;  %v676_v37 = vsel %vm636_vm2, %v3990_v34, 0.0 }
 0x132   : > { %v1303_v43 = vpop.f32.mrf.mxu0  ;;  %1494 = vmatmul.mubr.bf16.gmra.mxu0 %v3446_v35  ;;  %677 = vadd.xlane.f32.xlu1 %v676_v37 }
 0x133   : > { %v1607_v45 = vpack.c.bf16 %v1545_v42, %v1544_v41  ;;  %3045 = vmatprep.mubr.msk.bf16.mxu0 %vm1152_vm0, %v3447_v38  ;;  %v1304_v48 = vadd.f32 %v3907_v13, %v1303_v43  ;;  %v3458_v41 = vld [vmem:[%s3754_s11 + $0x1e0] ss:$8 sps:$4 sm:$0xff]   ;;  %v3998_v42 = vld [vmem:[%s3882_s27 + $0x78] sm:$0xff] }
 0x134   : > { %v1305_v47 = vpop.f32.mrf.mxu0  ;;  %v682_v46 = vsel %vm636_vm2, %v3998_v42, 0.0 }
 0x135   : > { %3169 = vmatmul.mubr.bf16.vlgmr.msra.gmra.mxu1 %v1607_v45  ;;  %v1546_v56 = vmax.f32 %v1304_v48, 0.0  ;;  %v3459_v45 = vld [vmem:[%s3754_s11 + $0x1f4] ss:$8 sps:$4 sm:$0xff]  }
 0x136   : > { %v1306_v49 = vpop.f32.mrf.mxu0  ;;  %683 = vadd.xlane.f32.xlu1 %v682_v46 }
 0x137   : > { %v1307_v52 = vadd.f32 %v3907_v13, %v1306_v49 }
 0x138   : > { %v1308_v55 = vpop.f32.mrf.mxu0 }
 0x139   : > { %v1547_v57 = vmax.f32 %v1307_v52, 0.0 }
 0x13a   : > { %v1311_v58 = vpop.f32.mrf.mxu0  ;;  %1502 = vmatmul.mubr.bf16.gmra.mxu0 %v3449_v50 }
 0x13b   : > { %v1608_v60 = vpack.c.bf16 %v1547_v57, %v1546_v56  ;;  %3046 = vmatprep.mubr.msk.bf16.mxu0 %vm1152_vm0, %v3450_v53  ;;  %v1312_v63 = vadd.f32 %v3907_v13, %v1311_v58  ;;  %v3461_v56 = vld [vmem:[%s3754_s11 + $0x1f0] ss:$8 sps:$4 sm:$0xff]  }
 0x13c   : > { %v1313_v62 = vpop.f32.mrf.mxu0 }
 0x13d   : > { %3172 = vmatprep.mubr.bf16.mxu1 %v1608_v60  ;;  %v1548_v9 = vmax.f32 %v1312_v63, 0.0 }
 0x13e   : > { %v1314_v0 = vpop.f32.mrf.mxu0 }
 0x13f   : > { %v1315_v3 = vadd.f32 %v3907_v13, %v1314_v0 }
 0x140   : > { %v1316_v8 = vpop.f32.mrf.mxu0 }
 0x141   : > { %v1549_v11 = vmax.f32 %v1315_v3, 0.0 }
 0x142   : > { %v1319_v12 = vpop.f32.mrf.mxu0  ;;  %1510 = vmatmul.mubr.bf16.gmra.mxu0 %v3452_v1 }
 0x143   : > { %v1609_v17 = vpack.c.bf16 %v1549_v11, %v1548_v9  ;;  %3047 = vmatprep.mubr.msk.bf16.mxu0 %vm1152_vm0, %v3453_v5  ;;  %v1320_v22 = vadd.f32 %v3907_v13, %v1319_v12 }
 0x144   : > { %v1321_v20 = vpop.f32.mrf.mxu0 }
 0x145   : > { %3173 = vmatmul.mubr.bf16.gmra.mxu1 %v1609_v17  ;;  %v1550_v31 = vmax.f32 %v1320_v22, 0.0 }
 0x146   : > { %v1322_v23 = vpop.f32.mrf.mxu0 }
 0x147   : > { %v1323_v26 = vadd.f32 %v3907_v13, %v1322_v23 }
 0x148   : > { %v1324_v30 = vpop.f32.mrf.mxu0 }
 0x149   : > { %v1551_v32 = vmax.f32 %v1323_v26, 0.0 }
 0x14a   : > { %v1327_v33 = vpop.f32.mrf.mxu0  ;;  %1518 = vmatmul.mubr.bf16.gmra.mxu0 %v3455_v24 }
 0x14b   : > { %v1610_v35 = vpack.c.bf16 %v1551_v32, %v1550_v31  ;;  %3048 = vmatprep.mubr.msk.bf16.mxu0 %vm1152_vm0, %v3456_v27  ;;  %v1328_v39 = vadd.f32 %v3907_v13, %v1327_v33 }
 0x14c   : > { %v1329_v38 = vpop.f32.mrf.mxu0 }
 0x14d   : > { %3176 = vmatprep.mubr.bf16.mxu1 %v1610_v35  ;;  %v1552_v48 = vmax.f32 %v1328_v39, 0.0 }
 0x14e   : > { %v1330_v40 = vpop.f32.mrf.mxu0 }
 0x14f   : > { %v1331_v43 = vadd.f32 %v3907_v13, %v1330_v40 }
 0x150   : > { %v1332_v47 = vpop.f32.mrf.mxu0 }
 0x151   : > { %v1553_v49 = vmax.f32 %v1331_v43, 0.0 }
 0x152   : > { %v1335_v50 = vpop.f32.mrf.mxu0  ;;  %1526 = vmatmul.mubr.bf16.gmra.mxu0 %v3458_v41 }
 0x153   : > { %v1611_v52 = vpack.c.bf16 %v1553_v49, %v1552_v48  ;;  %3049 = vmatprep.mubr.msk.bf16.mxu0 %vm1152_vm0, %v3459_v45  ;;  %v1336_v54 = vadd.f32 %v3907_v13, %v1335_v50 }
 0x154   : > { %v1337_v53 = vpop.f32.mrf.mxu0 }
 0x155   : > { %3177 = vmatmul.mubr.bf16.gmra.mxu1 %v1611_v52  ;;  %v1554_v60 = vmax.f32 %v1336_v54, 0.0 }
 0x156   : > { %v1338_v55 = vpop.f32.mrf.mxu0 }
 0x157   : > { %v1339_v57 = vadd.f32 %v3907_v13, %v1338_v55  ;;  %v3462_v55 = vld [vmem:[%s4606_s6 + $0x38] sm:$0xff]  }
 0x158   : > { %v1340_v58 = vpop.f32.mrf.mxu0  ;;  %3232 = vmatprep.subr.bf16.mxu1 %v3462_v55 }
 0x159   : > { %v1555_v61 = vmax.f32 %v1339_v57, 0.0  ;;  %3233 = vmatpush3.bf16.msra.mxu1 %v3462_v55 }
 0x15a   : > { %v1343_v62 = vpop.f32.mrf.mxu0  ;;  %1534 = vmatmul.mubr.bf16.gmra.mxu0 %v3461_v56 }
 0x15b   : > { %v1612_v63 = vpack.c.bf16 %v1555_v61, %v1554_v60  ;;  %v1344_v1 = vadd.f32 %v3907_v13, %v1343_v62 }
 0x15c   : > { %v1345_v0 = vpop.f32.mrf.mxu0 }
 0x15d   : > { %3180 = vmatprep.mubr.bf16.mxu1 %v1612_v63  ;;  %v1556_v8 = vmax.f32 %v1344_v1, 0.0 }
 0x15e   : > { %v1346_v3 = vpop.f32.mrf.mxu0 }
 0x15f   : > { %v1347_v5 = vadd.f32 %v3907_v13, %v1346_v3 }
 0x160   : > { %v1348_v6 = vpop.f32.mrf.mxu0 }
 0x161   : > { %v1557_v9 = vmax.f32 %v1347_v5, 0.0 }
 0x162   : > { %v1351_v11 = vpop.f32.mrf.mxu0 }
 0x163   : > { %v1613_v12 = vpack.c.bf16 %v1557_v9, %v1556_v8  ;;  %v1352_v18 = vadd.f32 %v3907_v13, %v1351_v11 }
 0x164   : > { %v1353_v17 = vpop.f32.mrf.mxu0 }
 0x165   : > { %3181 = vmatmul.mubr.bf16.gmra.mxu1 %v1613_v12  ;;  %v1558_v23 = vmax.f32 %v1352_v18, 0.0 }
 0x166   : > { %v1354_v19 = vpop.f32.mrf.mxu0 }
 0x167   : > { %v1355_v20 = vadd.f32 %v3907_v13, %v1354_v19  ;;  %v3463_v19 = vld [vmem:[%s4606_s6 + $0x30] sm:$0xff]  }
 0x168   : > { %v1356_v22 = vpop.f32.mrf.mxu0  ;;  %3234 = vmatprep.subr.bf16.mxu1 %v3463_v19 }
 0x169   : > { %v1559_v24 = vmax.f32 %v1355_v20, 0.0  ;;  %3235 = vmatpush3.bf16.msra.mxu1 %v3463_v19 }
 0x16a   : > { %v1359_v26 = vpop.f32.mrf.mxu0 }
 0x16b   : > { %v1614_v27 = vpack.c.bf16 %v1559_v24, %v1558_v23  ;;  %v1360_v30 = vadd.f32 %v3907_v13, %v1359_v26 }
 0x16c   : > { %v1361_v28 = vpop.f32.mrf.mxu0 }
 0x16d   : > { %3184 = vmatprep.mubr.bf16.mxu1 %v1614_v27  ;;  %v1560_v35 = vmax.f32 %v1360_v30, 0.0  ;;  %v3464_v28 = vld [vmem:[%s4606_s6 + $0x28] sm:$0xff]  }
 0x16e   : > { %v1362_v31 = vpop.f32.mrf.mxu0  ;;  %3236 = vmatprep.subr.bf16.mxu1 %v3464_v28 }
 0x16f   : > { %v1363_v32 = vadd.f32 %v3907_v13, %v1362_v31  ;;  %3237 = vmatpush3.bf16.msra.mxu1 %v3464_v28 }
 0x170   : > { %v1364_v33 = vpop.f32.mrf.mxu0 }
 0x171   : > { %v1561_v37 = vmax.f32 %v1363_v32, 0.0 }
 0x172   : > { %v1367_v38 = vpop.f32.mrf.mxu0 }
 0x173   : > { %v1615_v39 = vpack.c.bf16 %v1561_v37, %v1560_v35  ;;  %v1368_v41 = vadd.f32 %v3907_v13, %v1367_v38  ;;  %v3465_v35 = vld [vmem:[%s4606_s6 + $0x20] sm:$0xff]  }
 0x174   : > { %v1369_v40 = vpop.f32.mrf.mxu0  ;;  %3238 = vmatprep.subr.bf16.mxu1 %v3465_v35 }
 0x175   : > { %3185 = vmatmul.mubr.bf16.gmra.mxu1 %v1615_v39  ;;  %v1562_v47 = vmax.f32 %v1368_v41, 0.0 }
 0x176   : > { %v1370_v43 = vpop.f32.mrf.mxu0  ;;  %3239 = vmatpush3.bf16.msra.mxu1 %v3465_v35 }
 0x177   : > { %v1371_v45 = vadd.f32 %v3907_v13, %v1370_v43  ;;  %v3466_v43 = vld [vmem:[%s4606_s6 + $0x18] sm:$0xff]  }
 0x178   : > { %v1372_v46 = vpop.f32.mrf.mxu0  ;;  %3240 = vmatprep.subr.bf16.mxu1 %v3466_v43 }
 0x179   : > { %v1563_v48 = vmax.f32 %v1371_v45, 0.0 }
 0x17a   : > { %v1375_v49 = vpop.f32.mrf.mxu0  ;;  %3241 = vmatpush3.bf16.msra.mxu1 %v3466_v43 }
 0x17b   : > { %v1616_v50 = vpack.c.bf16 %v1563_v48, %v1562_v47  ;;  %v1376_v53 = vadd.f32 %v3907_v13, %v1375_v49  ;;  %v3467_v49 = vld [vmem:[%s4606_s6 + $0x10] sm:$0xff]  }
 0x17c   : > { %v1377_v52 = vpop.f32.mrf.mxu0  ;;  %3242 = vmatprep.subr.bf16.mxu1 %v3467_v49 }
 0x17d   : > { %3188 = vmatprep.mubr.bf16.mxu1 %v1616_v50  ;;  %v1564_v58 = vmax.f32 %v1376_v53, 0.0 }
 0x17e   : > { %v1378_v54 = vpop.f32.mrf.mxu0  ;;  %3243 = vmatpush3.bf16.msra.mxu1 %v3467_v49 }
 0x17f   : > { %v1379_v56 = vadd.f32 %v3907_v13, %v1378_v54  ;;  %v4044_v54 = vpop.xlane.xlu0 %638 }
 0x180   : > { %v1380_v57 = vpop.f32.mrf.mxu0 }
 0x181   : > { %v1565_v60 = vmax.f32 %v1379_v56, 0.0  ;;  %v3468_v57 = vld [vmem:[%s4606_s6 + $0x8] sm:$0xff]  }
 0x182   : > { %v1383_v61 = vpop.f32.mrf.mxu0  ;;  %3244 = vmatprep.subr.bf16.mxu1 %v3468_v57 }
 0x183   : > { %v1617_v62 = vpack.c.bf16 %v1565_v60, %v1564_v58  ;;  %v1384_v0 = vadd.f32 %v3907_v13, %v1383_v61  ;;  %v642_v61 = vpop.xlane.xlu0 %641  ;;  %3245 = vmatpush3.bf16.msra.mxu1 %v3468_v57 }
 0x184   : > { %v1385_v63 = vpop.f32.mrf.mxu0  ;;  %3470 = vrcp.f32 %v642_v61 }
 0x185   : > { %3189 = vmatmul.mubr.bf16.gmra.mxu1 %v1617_v62  ;;  %v1566_v6 = vmax.f32 %v1384_v0, 0.0  ;;  %v3469_v0 = vld [vmem:[%s4606_s6] sm:$0xff]  }
 0x186   : > { %v1386_v1 = vpop.f32.mrf.mxu0  ;;  %3246 = vmatprep.subr.bf16.mxu1 %v3469_v0 }
 0x187   : > { %v1387_v3 = vadd.f32 %v3907_v13, %v1386_v1  ;;  %3247 = vmatpush3.bf16.msra.mxu1 %v3469_v0 }
 0x188   : > { %v1388_v5 = vpop.f32.mrf.mxu0 }
 0x189   : > { %v1567_v8 = vmax.f32 %v1387_v3, 0.0 }
 0x18a   : > { %v1391_v9 = vpop.f32.mrf.mxu0 }
 0x18b   : > { %v1618_v11 = vpack.c.bf16 %v1567_v8, %v1566_v6  ;;  %v1392_v17 = vadd.f32 %v3907_v13, %v1391_v9  ;;  %v645_v6 = vpop.xlane.xlu1 %644 }
 0x18c   : > { %v1393_v12 = vpop.f32.mrf.mxu0  ;;  %3472 = vrcp.f32 %v645_v6 }
 0x18d   : > { %3192 = vmatprep.mubr.bf16.mxu1 %v1618_v11  ;;  %v1568_v23 = vmax.f32 %v1392_v17, 0.0 }
 0x18e   : > { %v1394_v18 = vpop.f32.mrf.mxu0 }
 0x18f   : > { %v1395_v20 = vadd.f32 %v3907_v13, %v1394_v18  ;;  %v648_v17 = vpop.xlane.xlu1 %647 }
 0x190   : > { %v1396_v22 = vpop.f32.mrf.mxu0  ;;  %3474 = vrcp.f32 %v648_v17 }
 0x191   : > { %v1569_v24 = vmax.f32 %v1395_v20, 0.0 }
 0x192   : > { %v1399_v26 = vpop.f32.mrf.mxu0 }
 0x193   : > { %v1619_v27 = vpack.c.bf16 %v1569_v24, %v1568_v23  ;;  %v1400_v31 = vadd.f32 %v3907_v13, %v1399_v26  ;;  %v651_v24 = vpop.xlane.xlu0 %650 }
 0x194   : > { %v1401_v30 = vpop.f32.mrf.mxu0  ;;  %3476 = vrcp.f32 %v651_v24 }
 0x195   : > { %3193 = vmatmul.mubr.bf16.gmra.mxu1 %v1619_v27  ;;  %v1570_v38 = vmax.f32 %v1400_v31, 0.0  ;;  %v3471_v27 = vpop.eup %3470 }
 0x196   : > { %v1402_v32 = vpop.f32.mrf.mxu0  ;;  %v4057_v31 = vmul.f32 %v3471_v27, %v3892_v7 }
 0x197   : > { %v1403_v33 = vadd.f32 %v3907_v13, %v1402_v32 }
 0x198   : > { %v1404_v37 = vpop.f32.mrf.mxu0  ;;  %2461 = vperm.xlu1 %3341, %v4057_v31  }
 0x199   : > { %v1571_v39 = vmax.f32 %v1403_v33, 0.0  ;;  %v654_v33 = vpop.xlane.xlu1 %653  ;;  %v3473_v37 = vpop.eup %3472 }
 0x19a   : > { %v1407_v40 = vpop.f32.mrf.mxu0  ;;  %3478 = vrcp.f32 %v654_v33 }
 0x19b   : > { %v1620_v41 = vpack.c.bf16 %v1571_v39, %v1570_v38  ;;  %v1408_v46 = vadd.f32 %v3907_v13, %v1407_v40  ;;  %v4063_v40 = vmul.f32 %v3473_v37, %v3899_v10 }
 0x19c   : > { %v1409_v45 = vpop.f32.mrf.mxu0 }
 0x19d   : > { %3196 = vmatprep.mubr.bf16.mxu1 %v1620_v41  ;;  %v1572_v52 = vmax.f32 %v1408_v46, 0.0  ;;  %v657_v45 = vpop.xlane.xlu0 %656  ;;  %2466 = vperm.xlu1 %3341, %v4063_v40   ;;  %v3475_v46 = vpop.eup %3474 }
 0x19e   : > { %v1410_v47 = vpop.f32.mrf.mxu0  ;;  %3480 = vrcp.f32 %v657_v45  ;;  %v4067_v49 = vmul.f32 %v3475_v46, %v3910_v15 }
 0x19f   : > { %v1411_v48 = vadd.f32 %v3907_v13, %v1410_v47 }
 0x1a0   : > { %v1412_v50 = vpop.f32.mrf.mxu0 }
 0x1a1   : > { %v1573_v53 = vmax.f32 %v1411_v48, 0.0  ;;  %2471 = vperm.xlu1 %3341, %v4067_v49   ;;  %v3477_v10 = vpop.eup %3476  ;;  %v663_v61 = vpop.xlane.xlu0 %662 }
 0x1a2   : > { %v1415_v55 = vpop.f32.mrf.mxu0  ;;  %v4073_v57 = vmul.f32 %v3477_v10, %v3918_v21 }
 0x1a3   : > { %v1621_v56 = vpack.c.bf16 %v1573_v53, %v1572_v52  ;;  %v1416_v60 = vadd.f32 %v3907_v13, %v1415_v55  ;;  %v660_v52 = vpop.xlane.xlu1 %659 }
 0x1a4   : > { %v1417_v58 = vpop.f32.mrf.mxu0  ;;  %3482 = vrcp.f32 %v660_v52 }
 0x1a5   : > { %3197 = vmatmul.mubr.bf16.gmra.mxu1 %v1621_v56  ;;  %v1574_v3 = vmax.f32 %v1416_v60, 0.0  ;;  %3484 = vrcp.f32 %v663_v61  ;;  %2476 = vperm.xlu1 %3341, %v4073_v57  }
 0x1a6   : > { %v1418_v62 = vpop.f32.mrf.mxu0 }
 0x1a7   : > { %v1419_v63 = vadd.f32 %v3907_v13, %v1418_v62  ;;  %v3479_v62 = vpop.eup %3478 }
 0x1a8   : > { %v1420_v1 = vpop.f32.mrf.mxu0 }
 0x1a9   : > { %v1575_v5 = vmax.f32 %v1419_v63, 0.0  ;;  %v4077_v1 = vmul.f32 %v3479_v62, %v3925_v29 }
 0x1aa   : > { %v1423_v8 = vpop.f32.mrf.mxu0 }
 0x1ab   : > { %v1622_v9 = vpack.c.bf16 %v1575_v5, %v1574_v3  ;;  %v1424_v12 = vadd.f32 %v3907_v13, %v1423_v8  ;;  %v669_v5 = vpop.xlane.xlu0 %668  ;;  %2481 = vperm.xlu1 %3341, %v4077_v1   ;;  %v3481_v21 = vpop.eup %3480 }
 0x1ac   : > { %v1425_v11 = vpop.f32.mrf.mxu0  ;;  %3486 = vrcp.f32 %v669_v5 }
 0x1ad   : > { %3200 = vmatprep.mubr.bf16.mxu1 %v1622_v9  ;;  %v1576_v22 = vmax.f32 %v1424_v12, 0.0  ;;  %3488 = vrcp.f32 %v4044_v54  ;;  %v4084_v11 = vmul.f32 %v3481_v21, %v3933_v36 }
 0x1ae   : > { %v1426_v18 = vpop.f32.mrf.mxu0 }
 0x1af   : > { %v1427_v19 = vadd.f32 %v3907_v13, %v1426_v18  ;;  %v675_v17 = vpop.xlane.xlu0 %674  ;;  %2486 = vperm.xlu1 %3341, %v4084_v11   ;;  %v666_v54 = vpop.xlane.xlu1 %665 }
 0x1b0   : > { %v1428_v20 = vpop.f32.mrf.mxu0  ;;  %3490 = vrcp.f32 %v675_v17 }
 0x1b1   : > { %v1577_v23 = vmax.f32 %v1427_v19, 0.0  ;;  %v3483_v19 = vpop.eup %3482  ;;  %3492 = vrcp.f32 %v666_v54 }
 0x1b2   : > { %v1431_v26 = vpop.f32.mrf.mxu0  ;;  %v3485_v27 = vpop.eup %3484 }
 0x1b3   : > { %v1623_v28 = vpack.c.bf16 %v1577_v23, %v1576_v22  ;;  %v1432_v32 = vadd.f32 %v3907_v13, %v1431_v26  ;;  %v4088_v23 = vmul.f32 %v3483_v19, %v3940_v44  ;;  %v681_v26 = vpop.xlane.xlu0 %680 }
 0x1b4   : > { %v1433_v30 = vpop.f32.mrf.mxu0  ;;  %3494 = vrcp.f32 %v681_v26 }
 0x1b5   : > { %3201 = vmatmul.mubr.bf16.gmra.mxu1 %v1623_v28  ;;  %v1578_v41 = vmax.f32 %v1432_v32, 0.0  ;;  %2491 = vperm.xlu1 %3341, %v4088_v23   ;;  %v4094_v32 = vmul.f32 %v3485_v27, %v3948_v51 }
 0x1b6   : > { %v1434_v35 = vpop.f32.mrf.mxu0 }
 0x1b7   : > { %v1435_v38 = vadd.f32 %v3907_v13, %v1434_v35  ;;  %v672_v35 = vpop.xlane.xlu1 %671 }
 0x1b8   : > { %v1436_v39 = vpop.f32.mrf.mxu0  ;;  %3496 = vrcp.f32 %v672_v35 }
 0x1b9   : > { %v1579_v43 = vmax.f32 %v1435_v38, 0.0  ;;  %2496 = vperm.xlu1 %3341, %v4094_v32   ;;  %v3487_v38 = vpop.eup %3486 }
 0x1ba   : > { %v1439_v7 = vpop.f32.mrf.mxu0  ;;  %v3489_v45 = vpop.eup %3488 }
 0x1bb   : > { %v1624_v47 = vpack.c.bf16 %v1579_v43, %v1578_v41  ;;  %v1440_v50 = vadd.f32 %v3907_v13, %v1439_v7  ;;  %v4098_v43 = vmul.f32 %v3487_v38, %v3955_v59  ;;  %v678_v46 = vpop.xlane.xlu1 %677  ;;  %v4104_v52 = vmul.f32 %v3489_v45, %v3886_v4 }
 0x1bc   : > { %v1441_v48 = vpop.f32.mrf.mxu0  ;;  %3498 = vrcp.f32 %v678_v46 }
 0x1bd   : > { %3204 = vmatprep.mubr.bf16.mxu1 %v1624_v47  ;;  %v1580_v58 = vmax.f32 %v1440_v50, 0.0  ;;  %2506 = vperm.xlu1 %3341, %v4098_v43   ;;  %v3491_v47 = vpop.eup %3490 }
 0x1be   : > { %v1442_v53 = vpop.f32.mrf.mxu0  ;;  %2456 = vperm.xlu0 %3340, %v4104_v52  }
 0x1bf   : > { %v1443_v55 = vadd.f32 %v3907_v13, %v1442_v53  ;;  %v4107_v53 = vmul.f32 %v3491_v47, %v3963_v2 }
 0x1c0   : > { %v1444_v56 = vpop.f32.mrf.mxu0 }
 0x1c1   : > { %v1581_v60 = vmax.f32 %v1443_v55, 0.0  ;;  %v684_v55 = vpop.xlane.xlu1 %683  ;;  %2516 = vperm.xlu1 %3341, %v4107_v53  }
 0x1c2   : > { %v1447_v15 = vpop.f32.mrf.mxu0  ;;  %3500 = vrcp.f32 %v684_v55 }
 0x1c3   : > { %v1625_v63 = vpack.c.bf16 %v1581_v60, %v1580_v58  ;;  %v1448_v3 = vadd.f32 %v3907_v13, %v1447_v15  ;;  %v3493_v58 = vpop.eup %3492 }
 0x1c4   : > { %v1449_v0 = vpop.f32.mrf.mxu0  ;;  %v3495_v61 = vpop.eup %3494  ;;  %v4112_v62 = vmul.f32 %v3493_v58, %v3970_v14 }
 0x1c5   : > { %3205 = vmatmul.mubr.bf16.gmra.mxu1 %v1625_v63  ;;  %v1582_v12 = vmax.f32 %v1448_v3, 0.0  ;;  %v4116_v2 = vmul.f32 %v3495_v61, %v3973_v16  ;;  %v3497_v0 = vpop.eup %3496 }
 0x1c6   : > { %v1450_v6 = vpop.f32.mrf.mxu0  ;;  %2501 = vperm.xlu0 %3340, %v4112_v62  }
 0x1c7   : > { %v1451_v8 = vadd.f32 %v3907_v13, %v1450_v6  ;;  %2526 = vperm.xlu1 %3341, %v4116_v2   ;;  %v4122_v6 = vmul.f32 %v3497_v0, %v3983_v25 }
 0x1c8   : > { %v1452_v9 = vpop.f32.mrf.mxu0 }
 0x1c9   : > { %v1583_v29 = vmax.f32 %v1451_v8, 0.0  ;;  %v3499_v9 = vpop.eup %3498 }
 0x1ca   : > { %v1455_v18 = vpop.f32.mrf.mxu0  ;;  %2511 = vperm.xlu0 %3340, %v4122_v6   ;;  %v4127_v17 = vmul.f32 %v3499_v9, %v3990_v34 }
 0x1cb   : > { %v1626_v20 = vpack.c.bf16 %v1583_v29, %v1582_v12  ;;  %v1456_v24 = vadd.f32 %v3907_v13, %v1455_v18  ;;  %v3528_v12 = vmov 1  }
 0x1cc   : > { %v1457_v22 = vpop.f32.mrf.mxu0  ;;  %3342 = vset.pattern.permute.xlu1 %v3528_v12 }
 0x1cd   : > { %3208 = vmatprep.mubr.bf16.mxu1 %v1626_v20  ;;  %v1584_v33 = vmax.f32 %v1456_v24, 0.0  ;;  %2551 = vperm.xlu1 %3342, %v4104_v52  }
 0x1ce   : > { %v1458_v36 = vpop.f32.mrf.mxu0  ;;  %2521 = vperm.xlu0 %3340, %v4127_v17  }
 0x1cf   : > { %v1459_v28 = vadd.f32 %v3907_v13, %v1458_v36  ;;  %v3501_v19 = vpop.eup %3500 }
 0x1d0   : > { %v1460_v30 = vpop.f32.mrf.mxu0  ;;  %v4134_v24 = vmul.f32 %v3501_v19, %v3998_v42 }
 0x1d1   : > { %v1585_v44 = vmax.f32 %v1459_v28, 0.0  ;;  %2559 = vperm.xlu1 %3342, %v4063_v40  }
 0x1d2   : > { %v1463_v37 = vpop.f32.mrf.mxu0  ;;  %2531 = vperm.xlu0 %3340, %v4134_v24  }
 0x1d3   : > { %v1627_v39 = vpack.c.bf16 %v1585_v44, %v1584_v33  ;;  %v1464_v7 = vadd.f32 %v3907_v13, %v1463_v37 }
 0x1d4   : > { %v1465_v41 = vpop.f32.mrf.mxu0 }
 0x1d5   : > { %3209 = vmatmul.mubr.bf16.gmra.mxu1 %v1627_v39  ;;  %v1586_v59 = vmax.f32 %v1464_v7, 0.0  ;;  %2563 = vperm.xlu1 %3342, %v4067_v49  }
 0x1d6   : > { %v1466_v51 = vpop.f32.mrf.mxu0  ;;  %3343 = vset.pattern.permute.xlu0 %v3528_v12  ;;  %v3529_v12 = vmov 2  }
 0x1d7   : > { %v1467_v48 = vadd.f32 %v3907_v13, %v1466_v51  ;;  %2555 = vperm.xlu0 %3343, %v4057_v31  }
 0x1d8   : > { %v1468_v50 = vpop.f32.mrf.mxu0 }
 0x1d9   : > { %v1587_v10 = vmax.f32 %v1467_v48, 0.0  ;;  %2571 = vperm.xlu1 %3342, %v4077_v1  }
 0x1da   : > { %v1471_v56 = vpop.f32.mrf.mxu0 }
 0x1db   : > { %v1628_v60 = vpack.c.bf16 %v1587_v10, %v1586_v59  ;;  %v1472_v4 = vadd.f32 %v3907_v13, %v1471_v56  ;;  %2567 = vperm.xlu0 %3343, %v4073_v57  }
 0x1dc   : > { %v1473_v15 = vpop.f32.mrf.mxu0 }
 0x1dd   : > { %3212 = vmatprep.mubr.bf16.mxu1 %v1628_v60  ;;  %v1588_v14 = vmax.f32 %v1472_v4, 0.0  ;;  %2579 = vperm.xlu1 %3342, %v4088_v23  }
 0x1de   : > { %v1474_v63 = vpop.f32.mrf.mxu0 }
 0x1df   : > { %v1475_v3 = vadd.f32 %v3907_v13, %v1474_v63  ;;  %2575 = vperm.xlu0 %3343, %v4084_v11  }
 0x1e0   : > { %v1476_v5 = vpop.f32.mrf.mxu0 }
 0x1e1   : > { %v1589_v21 = vmax.f32 %v1475_v3, 0.0  ;;  %2587 = vperm.xlu1 %3342, %v4112_v62  }
 0x1e2   : > { %v1479_v8 = vpop.f32.mrf.mxu0 }
 0x1e3   : > { %v1629_v16 = vpack.c.bf16 %v1589_v21, %v1588_v14  ;;  %v1480_v18 = vadd.f32 %v3907_v13, %v1479_v8  ;;  %2583 = vperm.xlu0 %3343, %v4094_v32  }
 0x1e4   : > { %v1481_v29 = vpop.f32.mrf.mxu0 }
 0x1e5   : > { %3213 = vmatmul.mubr.bf16.gmra.mxu1 %v1629_v16  ;;  %v1590_v54 = vmax.f32 %v1480_v18, 0.0  ;;  %2595 = vperm.xlu1 %3342, %v4122_v6  }
 0x1e6   : > { %v1482_v25 = vpop.f32.mrf.mxu0 }
 0x1e7   : > { %v1483_v20 = vadd.f32 %v3907_v13, %v1482_v25  ;;  %2591 = vperm.xlu0 %3343, %v4098_v43  }
 0x1e8   : > { %v1484_v22 = vpop.f32.mrf.mxu0 }
 0x1e9   : > { %v1591_v26 = vmax.f32 %v1483_v20, 0.0  ;;  %2603 = vperm.xlu1 %3342, %v4127_v17  }
 0x1ea   : > { %v1487_v36 = vpop.f32.mrf.mxu0 }
 0x1eb   : > { %v1630_v34 = vpack.c.bf16 %v1591_v26, %v1590_v54  ;;  %v1488_v28 = vadd.f32 %v3907_v13, %v1487_v36  ;;  %2599 = vperm.xlu0 %3343, %v4107_v53  }
 0x1ec   : > { %v1489_v27 = vpop.f32.mrf.mxu0 }
 0x1ed   : > { %3216 = vmatprep.mubr.bf16.mxu1 %v1630_v34  ;;  %v1592_v44 = vmax.f32 %v1488_v28, 0.0  ;;  %2611 = vperm.xlu1 %3342, %v4134_v24  }
 0x1ee   : > { %v1490_v30 = vpop.f32.mrf.mxu0 }
 0x1ef   : > { %v1491_v33 = vadd.f32 %v3907_v13, %v1490_v30  ;;  %2607 = vperm.xlu0 %3343, %v4116_v2  }
 0x1f0   : > { %v1492_v42 = vpop.f32.mrf.mxu0 }
 0x1f1   : > { %v1593_v35 = vmax.f32 %v1491_v33, 0.0  ;;  %3345 = vset.pattern.permute.xlu1 %v3529_v12 }
 0x1f2   : > { %v1495_v37 = vpop.f32.mrf.mxu0  ;;  %2651 = vperm.xlu1 %3345, %v4057_v31  }
 0x1f3   : > { %v1631_v38 = vpack.c.bf16 %v1593_v35, %v1592_v44  ;;  %v1496_v41 = vadd.f32 %v3907_v13, %v1495_v37  ;;  %3344 = vset.pattern.permute.xlu0 %v3529_v12 }
 0x1f4   : > { %v1497_v39 = vpop.f32.mrf.mxu0  ;;  %2647 = vperm.xlu0 %3344, %v4104_v52  }
 0x1f5   : > { %3217 = vmatmul.mubr.bf16.gmra.mxu1 %v1631_v38  ;;  %v1594_v51 = vmax.f32 %v1496_v41, 0.0  ;;  %v4148_v50 = vpop.f32.mrf.mxu1 }
 0x1f6   : > { %v1498_v45 = vpop.f32.mrf.mxu0  ;;  %2655 = vperm.xlu1 %3345, %v4063_v40  }
 0x1f7   : > { %v1499_v7 = vadd.f32 %v3907_v13, %v1498_v45  ;;  %v4153_v58 = vpop.f32.mrf.mxu1  ;;  %v3502_v45 = vld [vmem:[%s4603_s3] ss:$0 sm:$0xff] }
 0x1f8   : > { %v1500_v46 = vpop.f32.mrf.mxu0  ;;  %2659 = vperm.xlu0 %3344, %v4067_v49  }
 0x1f9   : > { %v1595_v47 = vmax.f32 %v1499_v7, 0.0  ;;  %v4158_v0 = vpop.f32.mrf.mxu1 }
 0x1fa   : > { %v1503_v48 = vpop.f32.mrf.mxu0  ;;  %2663 = vperm.xlu1 %3345, %v4073_v57  }
 0x1fb   : > { %v1632_v59 = vpack.c.bf16 %v1595_v47, %v1594_v51  ;;  %v1504_v55 = vadd.f32 %v3907_v13, %v1503_v48  ;;  %v1746_v8 = vpop.f32.mrf.mxu1 }
 0x1fc   : > { %v1505_v10 = vpop.f32.mrf.mxu0  ;;  %2667 = vperm.xlu0 %3344, %v4077_v1  }
 0x1fd   : > { %3220 = vmatprep.mubr.bf16.mxu1 %v1632_v59  ;;  %v1596_v15 = vmax.f32 %v1504_v55, 0.0 }
 0x1fe   : > { %v1506_v56 = vpop.f32.mrf.mxu0  ;;  %2671 = vperm.xlu1 %3345, %v4084_v11  }
 0x1ff   : > { %v1507_v60 = vadd.f32 %v3907_v13, %v1506_v56 }
 0x200   : > { %v1508_v61 = vpop.f32.mrf.mxu0  ;;  %2675 = vperm.xlu0 %3344, %v4088_v23  }
 0x201   : > { %v1597_v4 = vmax.f32 %v1507_v60, 0.0 }
 0x202   : > { %v1511_v63 = vpop.f32.mrf.mxu0  ;;  %2679 = vperm.xlu1 %3345, %v4094_v32  }
 0x203   : > { %v1633_v3 = vpack.c.bf16 %v1597_v4, %v1596_v15  ;;  %v1512_v14 = vadd.f32 %v3907_v13, %v1511_v63 }
 0x204   : > { %v1513_v5 = vpop.f32.mrf.mxu0  ;;  %2683 = vperm.xlu0 %3344, %v4112_v62  }
 0x205   : > { %3221 = vmatmul.mubr.bf16.gmra.mxu1 %v1633_v3  ;;  %v1598_v29 = vmax.f32 %v1512_v14, 0.0  ;;  %v4165_v18 = vpop.f32.mrf.mxu1 }
 0x206   : > { %v1514_v21 = vpop.f32.mrf.mxu0  ;;  %2687 = vperm.xlu1 %3345, %v4098_v43  }
 0x207   : > { %v1515_v9 = vadd.f32 %v3907_v13, %v1514_v21  ;;  %v1759_v54 = vpop.f32.mrf.mxu1 }
 0x208   : > { %v1516_v16 = vpop.f32.mrf.mxu0  ;;  %2691 = vperm.xlu0 %3344, %v4122_v6  }
 0x209   : > { %v1599_v25 = vmax.f32 %v1515_v9, 0.0  ;;  %v4173_v28 = vpop.f32.mrf.mxu1 }
 0x20a   : > { %v1519_v19 = vpop.f32.mrf.mxu0  ;;  %2695 = vperm.xlu1 %3345, %v4107_v53  }
 0x20b   : > { %v1634_v20 = vpack.c.bf16 %v1599_v25, %v1598_v29  ;;  %v1520_v26 = vadd.f32 %v3907_v13, %v1519_v19  ;;  %v1762_v37 = vpop.f32.mrf.mxu1 }
 0x20c   : > { %v1521_v22 = vpop.f32.mrf.mxu0  ;;  %2699 = vperm.xlu0 %3344, %v4127_v17  }
 0x20d   : > { %3224 = vmatprep.mubr.bf16.mxu1 %v1634_v20  ;;  %v1600_v30 = vmax.f32 %v1520_v26, 0.0 }
 0x20e   : > { %v1522_v36 = vpop.f32.mrf.mxu0  ;;  %2703 = vperm.xlu1 %3345, %v4116_v2  }
 0x20f   : > { %v1523_v34 = vadd.f32 %v3907_v13, %v1522_v36 }
 0x210   : > { %v1524_v27 = vpop.f32.mrf.mxu0  ;;  %2707 = vperm.xlu0 %3344, %v4134_v24  }
 0x211   : > { %v1601_v33 = vmax.f32 %v1523_v34, 0.0  ;;  %v3530_v34 = vmov 3  }
 0x212   : > { %v1527_v42 = vpop.f32.mrf.mxu0  ;;  %3346 = vset.pattern.permute.xlu1 %v3530_v34 }
 0x213   : > { %v1635_v44 = vpack.c.bf16 %v1601_v33, %v1600_v30  ;;  %v1528_v38 = vadd.f32 %v3907_v13, %v1527_v42  ;;  %v4189_v13 = vld [vmem:[%s4605_s5] ss:$0 sm:$0xff]  ;;  %2743 = vperm.xlu1 %3346, %v4104_v52  }
 0x214   : > { %v1529_v35 = vpop.f32.mrf.mxu0  ;;  %v1747_v55 = vadd.f32 %v4189_v13, %v1746_v8  ;;  %v1744_v61 = vadd.f32 %v4189_v13, %v4153_v58  ;;  %v1755_v9 = vadd.f32 %v4158_v0, %v4189_v13  ;;  %v1763_v29 = vadd.f32 %v4189_v13, %v1762_v37  ;;  %3347 = vset.pattern.permute.xlu0 %v3530_v34 }
 0x215   : > { %3225 = vmatmul.mubr.bf16.gmra.mxu1 %v1635_v44  ;;  %v4179_v41 = vpop.f32.mrf.mxu1  ;;  %v1602_v51 = vmax.f32 %v1528_v38, 0.0  ;;  %v1752_v25 = vadd.f32 %v4148_v50, %v4189_v13  ;;  %v1760_v20 = vadd.f32 %v4189_v13, %v1759_v54  ;;  %v1771_v50 = vadd.f32 %v4173_v28, %v4189_v13  ;;  %2747 = vperm.xlu0 %3347, %v4057_v31  }
 0x216   : > { %v1530_v39 = vpop.f32.mrf.mxu0  ;;  %v1999_v3 = vmax.f32 %v1747_v55, 0.0  ;;  %v1998_v8 = vmax.f32 %v1744_v61, 0.0  ;;  %v2001_v22 = vmax.f32 %v1755_v9, 0.0  ;;  %v2003_v26 = vmax.f32 %v1763_v29, 0.0 }
 0x217   : > { %v1531_v7 = vadd.f32 %v3502_v45, %v1530_v39  ;;  %v1775_v10 = vpop.f32.mrf.mxu1  ;;  %v2000_v0 = vmax.f32 %v1752_v25, 0.0  ;;  %v2002_v27 = vmax.f32 %v1760_v20, 0.0  ;;  %v1768_v54 = vadd.f32 %v4165_v18, %v4189_v13  ;;  %2751 = vperm.xlu1 %3346, %v4063_v40  }
 0x218   : > { %v1532_v46 = vpop.f32.mrf.mxu0  ;;  %v2062_v58 = vpack.c.bf16 %v1999_v3, %v1998_v8  ;;  %v1776_v35 = vadd.f32 %v4189_v13, %v1775_v10  ;;  %v2005_v52 = vmax.f32 %v1771_v50, 0.0 }
 0x219   : > { %v1603_v47 = vmax.f32 %v1531_v7, 0.0  ;;  %v3179_v4 = vpop.f32.mrf.mxu1  ;;  %v2063_v30 = vpack.c.bf16 %v2001_v22, %v2000_v0  ;;  %v2064_v42 = vpack.c.bf16 %v2003_v26, %v2002_v27  ;;  %v2004_v38 = vmax.f32 %v1768_v54, 0.0  ;;  %2759 = vperm.xlu0 %3347, %v4073_v57  }
 0x21a   : > { %v1535_v48 = vpop.f32.mrf.mxu0  ;;  %v2006_v39 = vmax.f32 %v1776_v35, 0.0  ;;  %v1787_v18 = vadd.f32 %v3179_v4, %v4189_v13  ;;  %v1784_v46 = vadd.f32 %v4179_v41, %v4189_v13 }
 0x21b   : > { %v1636_v59 = vpack.c.bf16 %v1603_v47, %v1602_v51  ;;  %v1536_v60 = vadd.f32 %v3502_v45, %v1535_v48  ;;  %v1778_v16 = vpop.f32.mrf.mxu1  ;;  %2755 = vperm.xlu1 %3346, %v4067_v49  }
 0x21c   : > { %v1537_v56 = vpop.f32.mrf.mxu0  ;;  %v1779_v33 = vadd.f32 %v4189_v13, %v1778_v16  ;;  %v2009_v57 = vmax.f32 %v1787_v18, 0.0  ;;  %v2008_v48 = vmax.f32 %v1784_v46, 0.0 }
 0x21d   : > { %3228 = vmatprep.mubr.bf16.mxu1 %v1636_v59  ;;  %v1604_v14 = vmax.f32 %v1536_v60, 0.0  ;;  %2767 = vperm.xlu0 %3347, %v4084_v11  }
 0x21e   : > { %v1538_v15 = vpop.f32.mrf.mxu0  ;;  %v2007_v37 = vmax.f32 %v1779_v33, 0.0  ;;  %v2067_v41 = vpack.c.bf16 %v2009_v57, %v2008_v48 }
 0x21f   : > { %v1539_v63 = vadd.f32 %v3502_v45, %v1538_v15  ;;  %v2065_v45 = vpack.c.bf16 %v2005_v52, %v2004_v38  ;;  %2763 = vperm.xlu1 %3346, %v4077_v1  }
 0x220   : > { %v1540_v5 = vpop.f32.mrf.mxu0  ;;  %v2066_v31 = vpack.c.bf16 %v2007_v37, %v2006_v39 }
 0x221   : > { %v1605_v21 = vmax.f32 %v1539_v63, 0.0  ;;  %2775 = vperm.xlu0 %3347, %v4094_v32  }
 0x223   : > { %v1637_v12 = vpack.c.bf16 %v1605_v21, %v1604_v14  ;;  %2771 = vperm.xlu1 %3346, %v4088_v23  }
 0x225   : > { %v3182_v19 = vpop.f32.mrf.mxu1  ;;  %3229 = vmatmul.mubr.bf16.gmra.mxu1 %v1637_v12  ;;  %2783 = vperm.xlu0 %3347, %v4098_v43  }
 0x226   : > { %3248 = vmatprep.mubr.bf16.mxu1 %v2062_v58  ;;  %v1800_v61 = vadd.f32 %v3182_v19, %v4189_v13 }
 0x227   : > { %v1791_v36 = vpop.f32.mrf.mxu1  ;;  %2779 = vperm.xlu1 %3346, %v4112_v62  }
 0x228   : > { %v1792_v40 = vadd.f32 %v4189_v13, %v1791_v36  ;;  %v2012_v23 = vmax.f32 %v1800_v61, 0.0 }
 0x229   : > { %v3183_v44 = vpop.f32.mrf.mxu1  ;;  %2791 = vperm.xlu0 %3347, %v4107_v53  }
 0x22a   : > { %v2010_v10 = vmax.f32 %v1792_v40, 0.0  ;;  %v1803_v55 = vadd.f32 %v3183_v44, %v4189_v13 }
 0x22b   : > { %v1794_v28 = vpop.f32.mrf.mxu1  ;;  %2787 = vperm.xlu1 %3346, %v4122_v6  }
 0x22c   : > { %v1795_v7 = vadd.f32 %v4189_v13, %v1794_v28  ;;  %v2013_v32 = vmax.f32 %v1803_v55, 0.0 }
 0x22d   : > { %3249 = vmatmul.mubr.bf16.vlgmr.msra.gmra.mxu1 %v2063_v30  ;;  %2799 = vperm.xlu0 %3347, %v4116_v2  }
 0x22e   : > { %3252 = vmatprep.mubr.bf16.mxu1 %v2064_v42  ;;  %v2011_v47 = vmax.f32 %v1795_v7, 0.0  ;;  %v2069_v63 = vpack.c.bf16 %v2013_v32, %v2012_v23 }
 0x22f   : > { %2795 = vperm.xlu1 %3346, %v4127_v17  }
 0x230   : > { %v2068_v60 = vpack.c.bf16 %v2011_v47, %v2010_v10 }
 0x233   : > { %2803 = vperm.xlu1 %3346, %v4134_v24  }
 0x235   : > { %v3186_v51 = vpop.f32.mrf.mxu1  ;;  %3253 = vmatmul.mubr.bf16.gmra.mxu1 %v2065_v45 }
 0x236   : > { %3256 = vmatprep.mubr.bf16.mxu1 %v2066_v31  ;;  %v1816_v14 = vadd.f32 %v3186_v51, %v4189_v13 }
 0x237   : > { %v1807_v49 = vpop.f32.mrf.mxu1 }
 0x238   : > { %v1808_v1 = vadd.f32 %v4189_v13, %v1807_v49  ;;  %v2016_v8 = vmax.f32 %v1816_v14, 0.0 }
 0x239   : > { %v3187_v59 = vpop.f32.mrf.mxu1 }
 0x23a   : > { %v2014_v4 = vmax.f32 %v1808_v1, 0.0  ;;  %v1819_v3 = vadd.f32 %v3187_v59, %v4189_v13 }
 0x23b   : > { %v1810_v56 = vpop.f32.mrf.mxu1 }
 0x23c   : > { %v1811_v11 = vadd.f32 %v4189_v13, %v1810_v56  ;;  %v2017_v62 = vmax.f32 %v1819_v3, 0.0 }
 0x23d   : > { %3257 = vmatmul.mubr.bf16.gmra.mxu1 %v2067_v41 }
 0x23e   : > { %3260 = vmatprep.mubr.bf16.mxu1 %v2068_v60  ;;  %v2015_v15 = vmax.f32 %v1811_v11, 0.0  ;;  %v2071_v6 = vpack.c.bf16 %v2017_v62, %v2016_v8 }
 0x240   : > { %v2070_v5 = vpack.c.bf16 %v2015_v15, %v2014_v4 }
 0x245   : > { %v3190_v43 = vpop.f32.mrf.mxu1  ;;  %3261 = vmatmul.mubr.bf16.gmra.mxu1 %v2069_v63 }
 0x246   : > { %3264 = vmatprep.mubr.bf16.mxu1 %v2070_v5  ;;  %v1832_v58 = vadd.f32 %v3190_v43, %v4189_v13 }
 0x247   : > { %v1823_v21 = vpop.f32.mrf.mxu1 }
 0x248   : > { %v1824_v9 = vadd.f32 %v4189_v13, %v1823_v21  ;;  %v2020_v20 = vmax.f32 %v1832_v58, 0.0 }
 0x249   : > { %v3191_v53 = vpop.f32.mrf.mxu1 }
 0x24a   : > { %v1835_v16 = vadd.f32 %v3191_v53, %v4189_v13  ;;  %v2018_v2 = vmax.f32 %v1824_v9, 0.0 }
 0x24b   : > { %v1826_v12 = vpop.f32.mrf.mxu1 }
 0x24c   : > { %v1827_v29 = vadd.f32 %v4189_v13, %v1826_v12  ;;  %v2021_v17 = vmax.f32 %v1835_v16, 0.0 }
 0x24d   : > { %3265 = vmatmul.mubr.bf16.gmra.mxu1 %v2071_v6 }
 0x24e   : > { %v2019_v25 = vmax.f32 %v1827_v29, 0.0  ;;  %v2073_v22 = vpack.c.bf16 %v2021_v17, %v2020_v20 }
 0x250   : > { %v2072_v19 = vpack.c.bf16 %v2019_v25, %v2018_v2 }
 0x252   : > { %3268 = vmatprep.mubr.bf16.mxu1 %v2072_v19 }
 0x255   : > { %v3194_v26 = vpop.f32.mrf.mxu1  ;;  %3269 = vmatmul.mubr.bf16.gmra.mxu1 %v2073_v22 }
 0x256   : > { %v1848_v27 = vadd.f32 %v3194_v26, %v4189_v13 }
 0x257   : > { %v1839_v0 = vpop.f32.mrf.mxu1 }
 0x258   : > { %v1840_v36 = vadd.f32 %v4189_v13, %v1839_v0  ;;  %v2024_v44 = vmax.f32 %v1848_v27, 0.0 }
 0x259   : > { %v3195_v24 = vpop.f32.mrf.mxu1 }
 0x25a   : > { %v1851_v34 = vadd.f32 %v3195_v24, %v4189_v13  ;;  %v2022_v42 = vmax.f32 %v1840_v36, 0.0 }
 0x25b   : > { %v1842_v30 = vpop.f32.mrf.mxu1 }
 0x25c   : > { %v1843_v50 = vadd.f32 %v4189_v13, %v1842_v30  ;;  %v2025_v33 = vmax.f32 %v1851_v34, 0.0 }
 0x25e   : > { %v2023_v54 = vmax.f32 %v1843_v50, 0.0  ;;  %v2075_v52 = vpack.c.bf16 %v2025_v33, %v2024_v44 }
 0x260   : > { %v2074_v35 = vpack.c.bf16 %v2023_v54, %v2022_v42 }
 0x262   : > { %3272 = vmatprep.mubr.bf16.mxu1 %v2074_v35 }
 0x263   : > { %3273 = vmatmul.mubr.bf16.gmra.mxu1 %v2075_v52 }
 0x265   : > { %v3198_v37 = vpop.f32.mrf.mxu1 }
 0x266   : > { %v1864_v18 = vadd.f32 %v3198_v37, %v4189_v13 }
 0x267   : > { %v1855_v38 = vpop.f32.mrf.mxu1 }
 0x268   : > { %v1856_v39 = vadd.f32 %v4189_v13, %v1855_v38  ;;  %v2028_v57 = vmax.f32 %v1864_v18, 0.0 }
 0x269   : > { %v3199_v28 = vpop.f32.mrf.mxu1 }
 0x26a   : > { %v1867_v45 = vadd.f32 %v3199_v28, %v4189_v13  ;;  %v2026_v51 = vmax.f32 %v1856_v39, 0.0 }
 0x26b   : > { %v1858_v7 = vpop.f32.mrf.mxu1 }
 0x26c   : > { %v1859_v31 = vadd.f32 %v4189_v13, %v1858_v7  ;;  %v2029_v46 = vmax.f32 %v1867_v45, 0.0 }
 0x26e   : > { %v2027_v40 = vmax.f32 %v1859_v31, 0.0  ;;  %v2077_v47 = vpack.c.bf16 %v2029_v46, %v2028_v57 }
 0x270   : > { %v2076_v49 = vpack.c.bf16 %v2027_v40, %v2026_v51 }
 0x272   : > { %3276 = vmatprep.mubr.bf16.mxu1 %v2076_v49 }
 0x273   : > { %3277 = vmatmul.mubr.bf16.gmra.mxu1 %v2077_v47 }
 0x275   : > { %v3202_v48 = vpop.f32.mrf.mxu1 }
 0x276   : > { %v1880_v56 = vadd.f32 %v3202_v48, %v4189_v13 }
 0x277   : > { %v1871_v59 = vpop.f32.mrf.mxu1 }
 0x278   : > { %v1872_v41 = vadd.f32 %v4189_v13, %v1871_v59  ;;  %v2032_v15 = vmax.f32 %v1880_v56, 0.0 }
 0x279   : > { %v3203_v10 = vpop.f32.mrf.mxu1 }
 0x27a   : > { %v1883_v55 = vadd.f32 %v3203_v10, %v4189_v13  ;;  %v2030_v1 = vmax.f32 %v1872_v41, 0.0 }
 0x27b   : > { %v1874_v11 = vpop.f32.mrf.mxu1 }
 0x27c   : > { %v1875_v60 = vadd.f32 %v4189_v13, %v1874_v11  ;;  %v2033_v61 = vmax.f32 %v1883_v55, 0.0  ;;  %v4272_v11 = vpop.permute.xlu1 %2461 }
 0x27e   : > { %v2031_v32 = vmax.f32 %v1875_v60, 0.0  ;;  %v2079_v4 = vpack.c.bf16 %v2033_v61, %v2032_v15 }
 0x280   : > { %v2078_v23 = vpack.c.bf16 %v2031_v32, %v2030_v1  ;;  %v4274_v1 = vpop.permute.xlu1 %2466 }
 0x282   : > { %3280 = vmatprep.mubr.bf16.mxu1 %v2078_v23 }
 0x283   : > { %3281 = vmatmul.mubr.bf16.gmra.mxu1 %v2079_v4 }
 0x285   : > { %v3206_v63 = vpop.f32.mrf.mxu1 }
 0x286   : > { %v1896_v62 = vadd.f32 %v3206_v63, %v4189_v13 }
 0x287   : > { %v1887_v3 = vpop.f32.mrf.mxu1 }
 0x288   : > { %v1888_v14 = vadd.f32 %v4189_v13, %v1887_v3  ;;  %v2036_v16 = vmax.f32 %v1896_v62, 0.0 }
 0x289   : > { %v3207_v5 = vpop.f32.mrf.mxu1 }
 0x28a   : > { %v1899_v43 = vadd.f32 %v3207_v5, %v4189_v13  ;;  %v2034_v9 = vmax.f32 %v1888_v14, 0.0  ;;  %v4280_v14 = vpop.permute.xlu1 %2471 }
 0x28b   : > { %v1890_v21 = vpop.f32.mrf.mxu1 }
 0x28c   : > { %v1891_v8 = vadd.f32 %v4189_v13, %v1890_v21  ;;  %v2037_v53 = vmax.f32 %v1899_v43, 0.0 }
 0x28e   : > { %v2035_v6 = vmax.f32 %v1891_v8, 0.0  ;;  %v2081_v29 = vpack.c.bf16 %v2037_v53, %v2036_v16 }
 0x290   : > { %v2080_v12 = vpack.c.bf16 %v2035_v6, %v2034_v9  ;;  %v4282_v6 = vpop.permute.xlu1 %2476 }
 0x292   : > { %3284 = vmatprep.mubr.bf16.mxu1 %v2080_v12 }
 0x293   : > { %3285 = vmatmul.mubr.bf16.gmra.mxu1 %v2081_v29 }
 0x294   : > { %v4284_v29 = vpop.permute.xlu1 %2481 }
 0x295   : > { %v3210_v58 = vpop.f32.mrf.mxu1 }
 0x296   : > { %v1912_v20 = vadd.f32 %v3210_v58, %v4189_v13 }
 0x297   : > { %v1903_v2 = vpop.f32.mrf.mxu1 }
 0x298   : > { %v1904_v17 = vadd.f32 %v4189_v13, %v1903_v2  ;;  %v2040_v34 = vmax.f32 %v1912_v20, 0.0 }
 0x299   : > { %v3211_v25 = vpop.f32.mrf.mxu1 }
 0x29a   : > { %v1915_v19 = vadd.f32 %v3211_v25, %v4189_v13  ;;  %v2038_v24 = vmax.f32 %v1904_v17, 0.0 }
 0x29b   : > { %v1906_v22 = vpop.f32.mrf.mxu1 }
 0x29c   : > { %v1907_v26 = vadd.f32 %v4189_v13, %v1906_v22  ;;  %v2041_v0 = vmax.f32 %v1915_v19, 0.0 }
 0x29e   : > { %v2039_v36 = vmax.f32 %v1907_v26, 0.0  ;;  %v2083_v30 = vpack.c.bf16 %v2041_v0, %v2040_v34 }
 0x2a0   : > { %v2082_v27 = vpack.c.bf16 %v2039_v36, %v2038_v24  ;;  %v4290_v24 = vpop.permute.xlu1 %2486 }
 0x2a2   : > { %3288 = vmatprep.mubr.bf16.mxu1 %v2082_v27 }
 0x2a3   : > { %3289 = vmatmul.mubr.bf16.gmra.mxu1 %v2083_v30 }
 0x2a4   : > { %v4292_v30 = vpop.permute.xlu1 %2491 }
 0x2a5   : > { %v3214_v50 = vpop.f32.mrf.mxu1 }
 0x2a6   : > { %v1928_v35 = vadd.f32 %v3214_v50, %v4189_v13 }
 0x2a7   : > { %v1919_v33 = vpop.f32.mrf.mxu1 }
 0x2a8   : > { %v1920_v54 = vadd.f32 %v4189_v13, %v1919_v33  ;;  %v2044_v45 = vmax.f32 %v1928_v35, 0.0  ;;  %v4296_v35 = vpop.permute.xlu1 %2496 }
 0x2a9   : > { %v3215_v42 = vpop.f32.mrf.mxu1 }
 0x2aa   : > { %v1931_v44 = vadd.f32 %v3215_v42, %v4189_v13  ;;  %v2042_v28 = vmax.f32 %v1920_v54, 0.0 }
 0x2ab   : > { %v1922_v52 = vpop.f32.mrf.mxu1 }
 0x2ac   : > { %v1923_v37 = vadd.f32 %v4189_v13, %v1922_v52  ;;  %v2045_v38 = vmax.f32 %v1931_v44, 0.0 }
 0x2ae   : > { %v2043_v39 = vmax.f32 %v1923_v37, 0.0  ;;  %v2085_v7 = vpack.c.bf16 %v2045_v38, %v2044_v45 }
 0x2b0   : > { %v2084_v18 = vpack.c.bf16 %v2043_v39, %v2042_v28  ;;  %v4300_v28 = vpop.permute.xlu0 %2456 }
 0x2b2   : > { %3292 = vmatprep.mubr.bf16.mxu1 %v2084_v18 }
 0x2b3   : > { %3293 = vmatmul.mubr.bf16.gmra.mxu1 %v2085_v7 }
 0x2b5   : > { %v3218_v31 = vpop.f32.mrf.mxu1 }
 0x2b6   : > { %v1944_v49 = vadd.f32 %v3218_v31, %v4189_v13 }
 0x2b7   : > { %v1935_v46 = vpop.f32.mrf.mxu1 }
 0x2b8   : > { %v1936_v40 = vadd.f32 %v4189_v13, %v1935_v46  ;;  %v2048_v55 = vmax.f32 %v1944_v49, 0.0 }
 0x2b9   : > { %v3219_v51 = vpop.f32.mrf.mxu1 }
 0x2ba   : > { %v1947_v57 = vadd.f32 %v3219_v51, %v4189_v13  ;;  %v2046_v10 = vmax.f32 %v1936_v40, 0.0  ;;  %v4304_v40 = vpop.permute.xlu1 %2506 }
 0x2bb   : > { %v1938_v47 = vpop.f32.mrf.mxu1 }
 0x2bc   : > { %v1939_v48 = vadd.f32 %v4189_v13, %v1938_v47  ;;  %v2049_v59 = vmax.f32 %v1947_v57, 0.0  ;;  %v4306_v47 = vpop.permute.xlu0 %2501 }
 0x2be   : > { %v2047_v41 = vmax.f32 %v1939_v48, 0.0  ;;  %v2087_v60 = vpack.c.bf16 %v2049_v59, %v2048_v55  ;;  %v4310_v59 = vpop.permute.xlu1 %2516 }
 0x2c0   : > { %v2086_v56 = vpack.c.bf16 %v2047_v41, %v2046_v10  ;;  %v4312_v41 = vpop.permute.xlu0 %2511 }
 0x2c2   : > { %3296 = vmatprep.mubr.bf16.mxu1 %v2086_v56 }
 0x2c3   : > { %3297 = vmatmul.mubr.bf16.gmra.mxu1 %v2087_v60  ;;  %v4314_v60 = vpop.permute.xlu1 %2526 }
 0x2c5   : > { %v3222_v61 = vpop.f32.mrf.mxu1 }
 0x2c6   : > { %v1960_v63 = vadd.f32 %v3222_v61, %v4189_v13 }
 0x2c7   : > { %v1951_v32 = vpop.f32.mrf.mxu1 }
 0x2c8   : > { %v1952_v23 = vadd.f32 %v4189_v13, %v1951_v32  ;;  %v2052_v8 = vmax.f32 %v1960_v63, 0.0  ;;  %v4316_v32 = vpop.permute.xlu0 %2521 }
 0x2c9   : > { %v3223_v15 = vpop.f32.mrf.mxu1 }
 0x2ca   : > { %v1963_v4 = vadd.f32 %v3223_v15, %v4189_v13  ;;  %v2050_v62 = vmax.f32 %v1952_v23, 0.0 }
 0x2cb   : > { %v1954_v3 = vpop.f32.mrf.mxu1 }
 0x2cc   : > { %v1955_v5 = vadd.f32 %v4189_v13, %v1954_v3  ;;  %v2053_v43 = vmax.f32 %v1963_v4, 0.0  ;;  %v4320_v4 = vpop.permute.xlu1 %2551  ;;  %v4324_v3 = vpop.permute.xlu0 %2531 }
 0x2ce   : > { %v2051_v21 = vmax.f32 %v1955_v5, 0.0  ;;  %v2089_v9 = vpack.c.bf16 %v2053_v43, %v2052_v8 }
 0x2d0   : > { %v2088_v53 = vpack.c.bf16 %v2051_v21, %v2050_v62  ;;  %v2560_v62 = vpop.permute.xlu1 %2559  ;;  %v4333_v21 = vld [vmem:[%s4607_s7] ss:$0 sm:$0xff] }
 0x2d2   : > { %3300 = vmatprep.mubr.bf16.mxu1 %v2088_v53  ;;  %v4337_v53 = vpop.permute.xlu0 %2555 }
 0x2d3   : > { %3301 = vmatmul.mubr.bf16.gmra.mxu1 %v2089_v9 }
 0x2d5   : > { %v3226_v16 = vpop.f32.mrf.mxu1 }
 0x2d6   : > { %v1976_v17 = vadd.f32 %v3226_v16, %v4189_v13 }
 0x2d7   : > { %v1967_v12 = vpop.f32.mrf.mxu1 }
 0x2d8   : > { %v1968_v2 = vadd.f32 %v4189_v13, %v1967_v12  ;;  %v2056_v36 = vmax.f32 %v1976_v17, 0.0 }
 0x2d9   : > { %v3227_v58 = vpop.f32.mrf.mxu1 }
 0x2da   : > { %v1979_v25 = vadd.f32 %v3227_v58, %v4189_v13  ;;  %v2054_v26 = vmax.f32 %v1968_v2, 0.0  ;;  %v2564_v2 = vpop.permute.xlu1 %2563 }
 0x2db   : > { %v1970_v19 = vpop.f32.mrf.mxu1 }
 0x2dc   : > { %v1971_v20 = vadd.f32 %v4189_v13, %v1970_v19  ;;  %v2057_v22 = vmax.f32 %v1979_v25, 0.0 }
 0x2de   : > { %v2055_v0 = vmax.f32 %v1971_v20, 0.0  ;;  %v2091_v27 = vpack.c.bf16 %v2057_v22, %v2056_v36  ;;  %v2568_v22 = vpop.permute.xlu0 %2567 }
 0x2e0   : > { %v2090_v34 = vpack.c.bf16 %v2055_v0, %v2054_v26 }
 0x2e2   : > { %3304 = vmatprep.mubr.bf16.mxu1 %v2090_v34 }
 0x2e3   : > { %3305 = vmatmul.mubr.bf16.gmra.mxu1 %v2091_v27 }
 0x2e5   : > { %v3230_v50 = vpop.f32.mrf.mxu1 }
 0x2e6   : > { %v1992_v52 = vadd.f32 %v3230_v50, %v4189_v13 }
 0x2e7   : > { %v1983_v33 = vpop.f32.mrf.mxu1 }
 0x2e8   : > { %v1984_v54 = vadd.f32 %v4189_v13, %v1983_v33  ;;  %v2060_v31 = vmax.f32 %v1992_v52, 0.0 }
 0x2e9   : > { %v3231_v42 = vpop.f32.mrf.mxu1 }
 0x2ea   : > { %v1995_v44 = vadd.f32 %v3231_v42, %v4189_v13  ;;  %v2058_v18 = vmax.f32 %v1984_v54, 0.0  ;;  %v2572_v42 = vpop.permute.xlu1 %2571 }
 0x2eb   : > { %v1986_v37 = vpop.f32.mrf.mxu1 }
 0x2ec   : > { %v1987_v38 = vadd.f32 %v4189_v13, %v1986_v37  ;;  %v2061_v39 = vmax.f32 %v1995_v44, 0.0  ;;  %v2576_v37 = vpop.permute.xlu0 %2575 }
 0x2ed   : > { %v3250_v45 = vpop.f32.mrf.mxu1 }
 0x2ee   : > { %v2059_v7 = vmax.f32 %v1987_v38, 0.0  ;;  %v2093_v57 = vpack.c.bf16 %v2061_v39, %v2060_v31  ;;  %v2208_v16 = vadd.f32 %v3250_v45, %v4333_v21 }
 0x2ef   : > { %v4302_v46 = vpop.f32.mrf.mxu1 }
 0x2f0   : > { %v2092_v51 = vpack.c.bf16 %v2059_v7, %v2058_v18  ;;  %v2536_v17 = vmul.f32 %v4274_v1, %v2208_v16 }
 0x2f1   : > { %v3251_v49 = vpop.f32.mrf.mxu1 }
 0x2f2   : > { %3308 = vmatprep.mubr.bf16.mxu1 %v2092_v51  ;;  %v2211_v19 = vadd.f32 %v3251_v49, %v4333_v21 }
 0x2f3   : > { %v4308_v48 = vpop.f32.mrf.mxu1  ;;  %3309 = vmatmul.mubr.bf16.gmra.mxu1 %v2093_v57 }
 0x2f4   : > { %v2537_v27 = vmul.f32 %v4280_v14, %v2211_v19 }
 0x2f5   : > { %v3254_v13 = vpop.f32.mrf.mxu1 }
 0x2f6   : > { %v2224_v50 = vadd.f32 %v3254_v13, %v4333_v21 }
 0x2f7   : > { %v2215_v10 = vpop.f32.mrf.mxu1 }
 0x2f8   : > { %v2216_v54 = vadd.f32 %v4333_v21, %v2215_v10  ;;  %v2540_v39 = vmul.f32 %v4290_v24, %v2224_v50  ;;  %v2580_v10 = vpop.permute.xlu1 %2579 }
 0x2f9   : > { %v3255_v55 = vpop.f32.mrf.mxu1 }
 0x2fa   : > { %v2227_v45 = vadd.f32 %v3255_v55, %v4333_v21  ;;  %v2538_v7 = vmul.f32 %v4282_v6, %v2216_v54 }
 0x2fb   : > { %v2218_v56 = vpop.f32.mrf.mxu1 }
 0x2fc   : > { %v2219_v51 = vadd.f32 %v4333_v21, %v2218_v56  ;;  %v2541_v16 = vmul.f32 %v4292_v30, %v2227_v45  ;;  %v2584_v56 = vpop.permute.xlu0 %2583 }
 0x2fd   : > { %v3258_v61 = vpop.f32.mrf.mxu1 }
 0x2fe   : > { %v2240_v19 = vadd.f32 %v3258_v61, %v4333_v21 }
 0x2ff   : > { %v2231_v15 = vpop.f32.mrf.mxu1 }
 0x300   : > { %v2544_v50 = vmul.f32 %v4304_v40, %v2240_v19 }
 0x301   : > { %v4318_v23 = vpop.f32.mrf.mxu1 }
 0x303   : > { %v4322_v63 = vpop.f32.mrf.mxu1 }
 0x304   : > { %v2235_v61 = vadd.f32 %v4333_v21, %v4322_v63 }
 0x305   : > { %v4326_v5 = vpop.f32.mrf.mxu1 }
 0x307   : > { %v4328_v43 = vpop.f32.mrf.mxu1 }
 0x309   : > { %v4335_v8 = vpop.f32.mrf.mxu1 }
 0x30b   : > { %v4339_v9 = vpop.f32.mrf.mxu1 }
 0x30d   : > { %v3266_v12 = vpop.f32.mrf.mxu1 }
 0x30e   : > { %v2272_v58 = vadd.f32 %v3266_v12, %v4333_v21 }
 0x30f   : > { %v4343_v25 = vpop.f32.mrf.mxu1 }
 0x310   : > { %v2616_v20 = vmul.f32 %v2560_v62, %v2272_v58  ;;  %v2539_v58 = vmul.f32 %v4284_v29, %v2219_v51  ;;  %v2243_v29 = vadd.f32 %v4318_v23, %v4333_v21  ;;  %v2256_v51 = vadd.f32 %v4326_v5, %v4333_v21 }
 0x311   : > { %v3267_v26 = vpop.f32.mrf.mxu1 }
 0x312   : > { %v4347_v0 = vadd.f32 %v2616_v20, %v2536_v17  ;;  %v2275_v36 = vadd.f32 %v3267_v26, %v4333_v21  ;;  %v2588_v20 = vpop.permute.xlu1 %2587  ;;  %v2545_v40 = vmul.f32 %v4312_v41, %v2243_v29  ;;  %v2248_v41 = vadd.f32 %v4333_v21, %v4328_v43 }
 0x313   : > { %v4350_v34 = vpop.f32.mrf.mxu1 }
 0x314   : > { %v2617_v33 = vmul.f32 %v2564_v2, %v2275_v36  ;;  %v2592_v36 = vpop.permute.xlu0 %2591 }
 0x315   : > { %v3270_v1 = vpop.f32.mrf.mxu1 }
 0x316   : > { %v4355_v44 = vadd.f32 %v2617_v33, %v2537_v27  ;;  %v2288_v52 = vadd.f32 %v3270_v1, %v4333_v21 }
 0x317   : > { %v2279_v38 = vpop.f32.mrf.mxu1 }
 0x318   : > { %v2620_v18 = vmul.f32 %v2576_v37, %v2288_v52  ;;  %v2280_v14 = vadd.f32 %v4333_v21, %v2279_v38  ;;  %v2596_v38 = vpop.permute.xlu1 %2595 }
 0x319   : > { %v3271_v31 = vpop.f32.mrf.mxu1 }
 0x31a   : > { %v4363_v57 = vadd.f32 %v2620_v18, %v2540_v39  ;;  %v2618_v49 = vmul.f32 %v2568_v22, %v2280_v14  ;;  %v2291_v13 = vadd.f32 %v3271_v31, %v4333_v21  ;;  %v2232_v22 = vadd.f32 %v4333_v21, %v2231_v15  ;;  %v2600_v31 = vpop.permute.xlu0 %2599 }
 0x31b   : > { %v2282_v62 = vpop.f32.mrf.mxu1 }
 0x31c   : > { %v4367_v24 = vadd.f32 %v2618_v49, %v2538_v7  ;;  %v2621_v55 = vmul.f32 %v2580_v10, %v2291_v13  ;;  %v2283_v12 = vadd.f32 %v4333_v21, %v2282_v62  ;;  %v2542_v54 = vmul.f32 %v4296_v35, %v2232_v22  ;;  %v2604_v49 = vpop.permute.xlu1 %2603 }
 0x31d   : > { %v2543_v35 = vmul.f32 %v4306_v47, %v2235_v61  ;;  %v2548_v47 = vmul.f32 %v4314_v60, %v2256_v51 }
 0x31e   : > { %v4371_v6 = vadd.f32 %v2621_v55, %v2541_v16  ;;  %v2619_v2 = vmul.f32 %v2572_v42, %v2283_v12  ;;  %v2608_v62 = vpop.permute.xlu0 %2607  ;;  %v2259_v55 = vadd.f32 %v4335_v8, %v4333_v21 }
 0x320   : > { %v4373_v17 = vadd.f32 %v2619_v2, %v2539_v58  ;;  %v2546_v2 = vmul.f32 %v4310_v59, %v2248_v41  ;;  %v2612_v22 = vpop.permute.xlu1 %2611  ;;  %v2549_v60 = vmul.f32 %v4324_v3, %v2259_v55 }
 0x322   : > { %v2648_v3 = vpop.permute.xlu0 %2647 }
 0x323   : > { %v3274_v26 = vpop.f32.mrf.mxu1 }
 0x324   : > { %v2304_v30 = vadd.f32 %v3274_v26, %v4333_v21 }
 0x325   : > { %v2295_v27 = vpop.f32.mrf.mxu1 }
 0x326   : > { %v2624_v33 = vmul.f32 %v2592_v36, %v2304_v30  ;;  %v2296_v42 = vadd.f32 %v4333_v21, %v2295_v27 }
 0x327   : > { %v3275_v1 = vpop.f32.mrf.mxu1 }
 0x328   : > { %v4385_v15 = vadd.f32 %v2624_v33, %v2544_v50  ;;  %v2622_v52 = vmul.f32 %v2584_v56, %v2296_v42  ;;  %v2307_v37 = vadd.f32 %v3275_v1, %v4333_v21  ;;  %v2251_v56 = vadd.f32 %v4333_v21, %v4339_v9  ;;  %v2652_v33 = vpop.permute.xlu1 %2651 }
 0x329   : > { %v2298_v39 = vpop.f32.mrf.mxu1 }
 0x32a   : > { %v4389_v45 = vadd.f32 %v2622_v52, %v2542_v54  ;;  %v2625_v23 = vmul.f32 %v2596_v38, %v2307_v37  ;;  %v2299_v18 = vadd.f32 %v4333_v21, %v2298_v39  ;;  %v2547_v59 = vmul.f32 %v4316_v32, %v2251_v56  ;;  %v2660_v39 = vpop.permute.xlu0 %2659 }
 0x32b   : > { %v2200_v56 = vadd.f32 %v4333_v21, %v4302_v46  ;;  %v2203_v46 = vadd.f32 %v4333_v21, %v4308_v48 }
 0x32c   : > { %v4393_v14 = vadd.f32 %v2625_v23, %v2545_v40  ;;  %v2623_v7 = vmul.f32 %v2588_v20, %v2299_v18  ;;  %v2656_v1 = vpop.permute.xlu1 %2655 }
 0x32d   : > { %v2535_v48 = vmul.f32 %v4272_v11, %v2203_v46 }
 0x32e   : > { %v4395_v63 = vadd.f32 %v2623_v7, %v2543_v35  ;;  %v4433_v18 = vpop.permute.xlu0 %2667 }
 0x330   : > { %v4423_v37 = vpop.permute.xlu1 %2663 }
 0x332   : > { %v4441_v51 = vpop.permute.xlu0 %2675 }
 0x333   : > { %v3278_v13 = vpop.f32.mrf.mxu1 }
 0x334   : > { %v2320_v10 = vadd.f32 %v3278_v13, %v4333_v21  ;;  %v4427_v32 = vpop.permute.xlu1 %2671 }
 0x335   : > { %v2311_v16 = vpop.f32.mrf.mxu1 }
 0x336   : > { %v2628_v12 = vmul.f32 %v2608_v62, %v2320_v10  ;;  %v2312_v58 = vadd.f32 %v4333_v21, %v2311_v16  ;;  %v4447_v13 = vpop.permute.xlu0 %2683 }
 0x337   : > { %v3279_v5 = vpop.f32.mrf.mxu1 }
 0x338   : > { %v4409_v43 = vadd.f32 %v2628_v12, %v2548_v47  ;;  %v2626_v19 = vmul.f32 %v2600_v31, %v2312_v58  ;;  %v2323_v20 = vadd.f32 %v3279_v5, %v4333_v21  ;;  %v4435_v35 = vpop.permute.xlu1 %2679  ;;  %v2264_v58 = vadd.f32 %v4333_v21, %v4343_v25 }
 0x339   : > { %v2314_v26 = vpop.f32.mrf.mxu1 }
 0x33a   : > { %v4413_v30 = vadd.f32 %v2626_v19, %v2546_v2  ;;  %v2629_v8 = vmul.f32 %v2612_v22, %v2323_v20  ;;  %v2315_v36 = vadd.f32 %v4333_v21, %v2314_v26  ;;  %v4455_v47 = vpop.permute.xlu0 %2691  ;;  %v2614_v26 = vmul.f32 %v4320_v4, %v2264_v58 }
 0x33c   : > { %v4417_v27 = vadd.f32 %v2629_v8, %v2549_v60  ;;  %v2627_v50 = vmul.f32 %v2604_v49, %v2315_v36  ;;  %v4443_v49 = vpop.permute.xlu1 %2687  ;;  %v2267_v60 = vadd.f32 %v4333_v21, %v4350_v34 }
 0x33e   : > { %4609 = vst [vmem:[#allocation3_spill] sm:$0xff] %v4417_v27  ;;  %v4419_v9 = vadd.f32 %v2627_v50, %v2547_v59  ;;  %v4468_v19 = vpop.permute.xlu0 %2699  ;;  %v2534_v59 = vmul.f32 %v4300_v28, %v2200_v56  ;;  %v2615_v34 = vmul.f32 %v4337_v53, %v2267_v60 }
 0x340   : > { %4610 = vst [vmem:[#allocation4_spill] sm:$0xff] %v4419_v9  ;;  %v4449_v10 = vpop.permute.xlu1 %2695  ;;  %v2630_v58 = vadd.f32 %v2614_v26, %v2534_v59 }
 0x342   : > { %v4483_v27 = vpop.permute.xlu0 %2707 }
 0x343   : > { %v3282_v29 = vpop.f32.mrf.mxu1 }
 0x344   : > { %v4457_v55 = vpop.permute.xlu1 %2703  ;;  %v2336_v5 = vadd.f32 %v3282_v29, %v4333_v21 }
 0x345   : > { %v2327_v42 = vpop.f32.mrf.mxu1 }
 0x346   : > { %v2328_v22 = vadd.f32 %v4333_v21, %v2327_v42  ;;  %v2712_v25 = vmul.f32 %v2656_v1, %v2336_v5  ;;  %v2748_v46 = vpop.permute.xlu0 %2747 }
 0x347   : > { %v3283_v54 = vpop.f32.mrf.mxu1 }
 0x348   : > { %v2744_v20 = vpop.permute.xlu1 %2743  ;;  %v2339_v36 = vadd.f32 %v3283_v54, %v4333_v21  ;;  %v2710_v29 = vmul.f32 %v2648_v3, %v2328_v22  ;;  %v2728_v54 = vadd.f32 %v2712_v25, %v4347_v0  ;;  %v2631_v22 = vadd.f32 %v2615_v34, %v2535_v48 }
 0x349   : > { %v2330_v61 = vpop.f32.mrf.mxu1 }
 0x34a   : > { %v2331_v42 = vadd.f32 %v4333_v21, %v2330_v61  ;;  %v2713_v5 = vmul.f32 %v2660_v39, %v2339_v36 }
 0x34c   : > { %v2752_v50 = vpop.permute.xlu1 %2751  ;;  %v2711_v61 = vmul.f32 %v2652_v33, %v2331_v42  ;;  %v2729_v25 = vadd.f32 %v2713_v5, %v4355_v44 }
 0x350   : > { %v2756_v26 = vpop.permute.xlu1 %2755 }
 0x353   : > { %v4421_v52 = vpop.f32.mrf.mxu1 }
 0x354   : > { %v2764_v5 = vpop.permute.xlu1 %2763 }
 0x355   : > { %v4425_v38 = vpop.f32.mrf.mxu1 }
 0x356   : > { %v2344_v44 = vadd.f32 %v4333_v21, %v4425_v38 }
 0x357   : > { %v4429_v40 = vpop.f32.mrf.mxu1 }
 0x358   : > { %v2355_v34 = vadd.f32 %v4429_v40, %v4333_v21 }
 0x359   : > { %v4431_v23 = vpop.f32.mrf.mxu1 }
 0x363   : > { %v4437_v7 = vpop.f32.mrf.mxu1 }
 0x365   : > { %v4439_v31 = vpop.f32.mrf.mxu1 }
 0x367   : > { %v4445_v41 = vpop.f32.mrf.mxu1 }
 0x369   : > { %v4451_v62 = vpop.f32.mrf.mxu1 }
 0x373   : > { %v4453_v16 = vpop.f32.mrf.mxu1 }
 0x375   : > { %v4459_v12 = vpop.f32.mrf.mxu1 }
 0x377   : > { %v4463_v2 = vpop.f32.mrf.mxu1 }
 0x379   : > { %v4474_v8 = vpop.f32.mrf.mxu1 }
 0x383   : > { %v3298_v9 = vpop.f32.mrf.mxu1 }
 0x384   : > { %v2400_v4 = vadd.f32 %v3298_v9, %v4333_v21  ;;  %v2726_v9 = vadd.f32 %v2710_v29, %v2630_v58  ;;  %v2352_v29 = vadd.f32 %v4421_v52, %v4333_v21  ;;  %v2347_v52 = vadd.f32 %v4333_v21, %v4431_v23 }
 0x385   : > { %v2391_v1 = vpop.f32.mrf.mxu1 }
 0x386   : > { %v2808_v28 = vmul.f32 %v2752_v50, %v2400_v4  ;;  %v2392_v56 = vadd.f32 %v4333_v21, %v2391_v1  ;;  %v2727_v50 = vadd.f32 %v2711_v61, %v2631_v22  ;;  %v2760_v4 = vpop.permute.xlu0 %2759  ;;  %v2716_v58 = vmul.f32 %v4427_v32, %v2352_v29 }
 0x387   : > { %v3299_v53 = vpop.f32.mrf.mxu1  ;;  %v2714_v1 = vmul.f32 %v4423_v37, %v2344_v44  ;;  %v2715_v61 = vmul.f32 %v4433_v18, %v2347_v52 }
 0x388   : > { %v2824_v3 = vadd.f32 %v2808_v28, %v2728_v54  ;;  %v2806_v0 = vmul.f32 %v2744_v20, %v2392_v56  ;;  %v2403_v39 = vadd.f32 %v3299_v53, %v4333_v21  ;;  %v2732_v48 = vadd.f32 %v2716_v58, %v4363_v57 }
 0x389   : > { %v2394_v60 = vpop.f32.mrf.mxu1  ;;  %v2730_v37 = vadd.f32 %v2714_v1, %v4367_v24  ;;  %v2731_v24 = vadd.f32 %v2715_v61, %v4373_v17  ;;  %v2371_v17 = vadd.f32 %v4445_v41, %v4333_v21 }
 0x38a   : > { %2841 = vst.msk [vmem:[%s4492_s21 + $0x10] sm:$0xff] %vm2838_vm3, %v2824_v3  ;;  %v2822_v36 = vadd.f32 %v2806_v0, %v2726_v9  ;;  %v2809_v11 = vmul.f32 %v2756_v26, %v2403_v39  ;;  %v2395_v59 = vadd.f32 %v4333_v21, %v2394_v60  ;;  %v2768_v56 = vpop.permute.xlu0 %2767  ;;  %v2717_v9 = vmul.f32 %v4441_v51, %v2355_v34  ;;  %v2772_v39 = vpop.permute.xlu1 %2771 }
 0x38c   : > { %2839 = vst.msk [vmem:[%s4492_s21] sm:$0xff] %vm2838_vm3, %v2822_v36  ;;  %v2825_v33 = vadd.f32 %v2809_v11, %v2729_v25  ;;  %v2807_v20 = vmul.f32 %v2748_v46, %v2395_v59  ;;  %v2733_v57 = vadd.f32 %v2717_v9, %v4371_v6  ;;  %v2368_v36 = vadd.f32 %v4437_v7, %v4333_v21 }
 0x38d   : > { %v2360_v6 = vadd.f32 %v4333_v21, %v4439_v31  ;;  %v2363_v7 = vadd.f32 %v4333_v21, %v4451_v62 }
 0x38e   : > { %2842 = vst.msk [vmem:[%s4492_s21 + $0x18] sm:$0xff] %vm2838_vm3, %v2825_v33  ;;  %v2823_v42 = vadd.f32 %v2807_v20, %v2727_v50  ;;  %v2776_v59 = vpop.permute.xlu0 %2775  ;;  %v2720_v46 = vmul.f32 %v4443_v49, %v2368_v36  ;;  %v2780_v50 = vpop.permute.xlu1 %2779 }
 0x38f   : > { %v2718_v33 = vmul.f32 %v4435_v35, %v2360_v6  ;;  %v2719_v34 = vmul.f32 %v4447_v13, %v2363_v7 }
 0x390   : > { %2840 = vst.msk [vmem:[%s4492_s21 + $0x8] sm:$0xff] %vm2838_vm3, %v2823_v42  ;;  %v2736_v31 = vadd.f32 %v2720_v46, %v4385_v15 }
 0x391   : > { %v2734_v58 = vadd.f32 %v2718_v33, %v4389_v45  ;;  %v2735_v45 = vadd.f32 %v2719_v34, %v4395_v63  ;;  %v2387_v63 = vadd.f32 %v4463_v2, %v4333_v21 }
 0x392   : > { %v2784_v42 = vpop.permute.xlu0 %2783 }
 0x393   : > { %v3302_v54 = vpop.f32.mrf.mxu1 }
 0x394   : > { %v2416_v28 = vadd.f32 %v3302_v54, %v4333_v21 }
 0x395   : > { %v2407_v38 = vpop.f32.mrf.mxu1 }
 0x396   : > { %v2812_v32 = vmul.f32 %v2768_v56, %v2416_v28  ;;  %v2408_v40 = vadd.f32 %v4333_v21, %v2407_v38 }
 0x397   : > { %v3303_v53 = vpop.f32.mrf.mxu1 }
 0x398   : > { %v2828_v23 = vadd.f32 %v2812_v32, %v2732_v48  ;;  %v2810_v3 = vmul.f32 %v2760_v4, %v2408_v40  ;;  %v2419_v0 = vadd.f32 %v3303_v53, %v4333_v21  ;;  %v2721_v4 = vmul.f32 %v4455_v47, %v2371_v17  ;;  %v2792_v32 = vpop.permute.xlu0 %2791 }
 0x399   : > { %v2410_v22 = vpop.f32.mrf.mxu1  ;;  %v2384_v48 = vadd.f32 %v4453_v16, %v4333_v21  ;;  %v2379_v16 = vadd.f32 %v4333_v21, %v4474_v8 }
 0x39a   : > { %2845 = vst.msk [vmem:[%s4492_s21 + $0x30] sm:$0xff] %vm2838_vm3, %v2828_v23  ;;  %v2826_v51 = vadd.f32 %v2810_v3, %v2730_v37  ;;  %v2813_v26 = vmul.f32 %v2772_v39, %v2419_v0  ;;  %v2411_v60 = vadd.f32 %v4333_v21, %v2410_v22  ;;  %v2737_v15 = vadd.f32 %v2721_v4, %v4393_v14 }
 0x39b   : > { %v2376_v14 = vadd.f32 %v4333_v21, %v4459_v12  ;;  %v2724_v40 = vmul.f32 %v4457_v55, %v2384_v48  ;;  %v2725_v39 = vmul.f32 %v4483_v27, %v2387_v63 }
 0x39c   : > { %2843 = vst.msk [vmem:[%s4492_s21 + $0x20] sm:$0xff] %vm2838_vm3, %v2826_v51  ;;  %v2829_v18 = vadd.f32 %v2813_v26, %v2733_v57  ;;  %v2811_v25 = vmul.f32 %v2764_v5, %v2411_v60  ;;  %v2788_v5 = vpop.permute.xlu1 %2787  ;;  %v2800_v3 = vpop.permute.xlu0 %2799  ;;  %v2723_v57 = vmul.f32 %v4468_v19, %v2379_v16 }
 0x39d   : > { %v2722_v53 = vmul.f32 %v4449_v10, %v2376_v14  ;;  %v2740_v12 = vadd.f32 %v2724_v40, %v4409_v43  ;;  %v4611_v43 = vld [vmem:[#allocation3_spill] sm:$0xff] }
 0x39e   : > { %2846 = vst.msk [vmem:[%s4492_s21 + $0x38] sm:$0xff] %vm2838_vm3, %v2829_v18  ;;  %v2827_v11 = vadd.f32 %v2811_v25, %v2731_v24  ;;  %v2741_v18 = vadd.f32 %v2725_v39, %v4611_v43 }
 0x39f   : > { %v2738_v22 = vadd.f32 %v2722_v53, %v4413_v30  ;;  %v4612_v30 = vld [vmem:[#allocation4_spill] sm:$0xff] }
 0x3a0   : > { %2844 = vst.msk [vmem:[%s4492_s21 + $0x28] sm:$0xff] %vm2838_vm3, %v2827_v11  ;;  %v2796_v37 = vpop.permute.xlu1 %2795  ;;  %v2739_v11 = vadd.f32 %v2723_v57, %v4612_v30 }
 0x3a3   : > { %v3306_v20 = vpop.f32.mrf.mxu1 }
 0x3a4   : > { %v2432_v29 = vadd.f32 %v3306_v20, %v4333_v21  ;;  %v2804_v60 = vpop.permute.xlu1 %2803 }
 0x3a5   : > { %v2423_v44 = vpop.f32.mrf.mxu1 }
 0x3a6   : > { %v2816_v49 = vmul.f32 %v2784_v42, %v2432_v29  ;;  %v2424_v41 = vadd.f32 %v4333_v21, %v2423_v44 }
 0x3a7   : > { %v3307_v35 = vpop.f32.mrf.mxu1 }
 0x3a8   : > { %v2832_v62 = vadd.f32 %v2816_v49, %v2736_v31  ;;  %v2814_v1 = vmul.f32 %v2776_v59, %v2424_v41  ;;  %v2435_v54 = vadd.f32 %v3307_v35, %v4333_v21 }
 0x3a9   : > { %v2426_v52 = vpop.f32.mrf.mxu1 }
 0x3aa   : > { %2849 = vst.msk [vmem:[%s4492_s21 + $0x50] sm:$0xff] %vm2838_vm3, %v2832_v62  ;;  %v2830_v47 = vadd.f32 %v2814_v1, %v2734_v58  ;;  %v2817_v28 = vmul.f32 %v2788_v5, %v2435_v54  ;;  %v2427_v56 = vadd.f32 %v4333_v21, %v2426_v52 }
 0x3ac   : > { %2847 = vst.msk [vmem:[%s4492_s21 + $0x40] sm:$0xff] %vm2838_vm3, %v2830_v47  ;;  %v2833_v13 = vadd.f32 %v2817_v28, %v2737_v15  ;;  %v2815_v38 = vmul.f32 %v2780_v50, %v2427_v56 }
 0x3ae   : > { %2850 = vst.msk [vmem:[%s4492_s21 + $0x58] sm:$0xff] %vm2838_vm3, %v2833_v13  ;;  %v2831_v9 = vadd.f32 %v2815_v38, %v2735_v45 }
 0x3b0   : > { %2848 = vst.msk [vmem:[%s4492_s21 + $0x48] sm:$0xff] %vm2838_vm3, %v2831_v9 }
 0x3b3   : > { %v3310_v61 = vpop.f32.mrf.mxu1 }
 0x3b4   : > { %v2448_v23 = vadd.f32 %v3310_v61, %v4333_v21 }
 0x3b5   : > { %v2439_v0 = vpop.f32.mrf.mxu1 }
 0x3b6   : > { %v2820_v55 = vmul.f32 %v2800_v3, %v2448_v23  ;;  %v2440_v2 = vadd.f32 %v4333_v21, %v2439_v0 }
 0x3b7   : > { %v3311_v10 = vpop.f32.mrf.mxu1 }
 0x3b8   : > { %v2836_v8 = vadd.f32 %v2820_v55, %v2740_v12  ;;  %v2818_v51 = vmul.f32 %v2792_v32, %v2440_v2  ;;  %v2451_v26 = vadd.f32 %v3311_v10, %v4333_v21 }
 0x3b9   : > { %v2442_v24 = vpop.f32.mrf.mxu1 }
 0x3ba   : > { %2853 = vst.msk [vmem:[%s4492_s21 + $0x70] sm:$0xff] %vm2838_vm3, %v2836_v8  ;;  %v2834_v27 = vadd.f32 %v2818_v51, %v2738_v22  ;;  %v2821_v25 = vmul.f32 %v2804_v60, %v2451_v26  ;;  %v2443_v36 = vadd.f32 %v4333_v21, %v2442_v24 }
 0x3bc   : > { %2851 = vst.msk [vmem:[%s4492_s21 + $0x60] sm:$0xff] %vm2838_vm3, %v2834_v27  ;;  %v2837_v19 = vadd.f32 %v2821_v25, %v2741_v18  ;;  %v2819_v59 = vmul.f32 %v2796_v37, %v2443_v36 }
 0x3be   : > { %2854 = vst.msk [vmem:[%s4492_s21 + $0x78] sm:$0xff] %vm2838_vm3, %v2837_v19  ;;  %v2835_v6 = vadd.f32 %v2819_v59, %v2739_v11 }
 0x3c0   : > { %2852 = vst.msk [vmem:[%s4492_s21 + $0x68] sm:$0xff] %vm2838_vm3, %v2835_v6 }
 0x3c1 PF: > { %p15_p9 = scmp.ge.s32.totalorder %s3593_s9, 4   ;;  %s4613_s27 = smov %s3521_s28 }
 0x3c2   : > { %s4614_s28 = smov %s3602_s12  ;;  %s4615_s29 = smov %s3593_s9 }
 0x3c3   :  { %17 = sbr.rel (!%p15_p9) target bundleno = 2 (0x2), region = 128 }

</bundles_post_ra>
